<compile_context>
chip_gen: v6e
topology: v6e:2x2x1
jax: 0.10.0
libtpu: 0.0.40
codegen_flags: <defaults>
</compile_context>

<pallas_src>
import functools

import jax
import jax.numpy as jnp
from jax import lax
from jax.experimental import pallas as pl
from jax.experimental.pallas import tpu as pltpu


def _round_up(x, m):
    return ((x + m - 1) // m) * m


def _actor_kernel(x_ref,      # (T, Bc, S)   f32, time-major batch chunk
                  wih_ref,    # (S, 4*Hp)    bf16, i/f/o cols pre-scaled 0.5
                  whh_ref,    # (Hp, 4*Hp)   bf16, i/f/o cols pre-scaled 0.5
                  b_ref,      # (1, 4*Hp)    f32,  (b_ih + b_hh), pre-scaled
                  wd_ref,     # (Hp, A)      bf16, lstm_dense weight (transposed)
                  bd_ref,     # (1, A)       f32,  lstm_dense bias
                  means_ref,  # (T, Bc, A)   f32 output
                  xp_ref,     # scratch (T*Bc, 4*Hp) bf16 : hoisted input proj
                  hs_ref,     # scratch (T*Bc, Hp)   bf16 : all hidden states
                  *, T, Bc, Hp):
    S = x_ref.shape[-1]
    A = means_ref.shape[-1]

    # (1) Hoisted input projection: one bf16 GEMM (f32 accum) + bias for the
    #     whole (T, Bc) block. Reshape merges leading dims only (Bc % 8 == 0,
    #     f32 source) so it is layout-free.
    x2 = x_ref[...].reshape(T * Bc, S).astype(jnp.bfloat16)
    xp = jnp.dot(x2, wih_ref[...], preferred_element_type=jnp.float32)
    xp_ref[...] = (xp + b_ref[...]).astype(xp_ref.dtype)

    # (2) Recurrence: (h, c) live in vregs in f32; bf16 MXU for h @ W_hh.
    h0 = jnp.zeros((Bc, Hp), jnp.float32)
    c0 = jnp.zeros((Bc, Hp), jnp.float32)

    def step(t, carry):
        h, c = carry
        row = pl.ds(pl.multiple_of(t * Bc, 8), Bc)
        gates = (xp_ref[row, :].astype(jnp.float32)
                 + jnp.dot(h.astype(jnp.bfloat16), whh_ref[...],
                           preferred_element_type=jnp.float32))
        # One EUP tanh over the full (Bc, 4*Hp) tile; sigmoid(z) recovered as
        # 0.5*(tanh(z/2)+1) because the 0.5 scaling was folded into weights.
        # All gate slices below are 128-lane aligned (Hp % 128 == 0).
        tg = jnp.tanh(gates)
        i = 0.5 * (tg[:, 0:Hp] + 1.0)
        f = 0.5 * (tg[:, Hp:2 * Hp] + 1.0)
        g = tg[:, 2 * Hp:3 * Hp]             # cell candidate (unscaled column)
        o = 0.5 * (tg[:, 3 * Hp:4 * Hp] + 1.0)
        c = f * c + i * g
        h = o * jnp.tanh(c)
        hs_ref[row, :] = h.astype(hs_ref.dtype)
        return h, c

    lax.fori_loop(0, T, step, (h0, c0), unroll=(T if T <= 8 else 4))

    # (3) Hoisted dense head: one bf16 GEMM + tanh, one block store.
    m = jnp.dot(hs_ref[...], wd_ref[...], preferred_element_type=jnp.float32)
    means_ref[...] = jnp.tanh(m + bd_ref[...]).reshape(T, Bc, A)


def actor_forward(states, params, log_std_min=-10.0, log_std_max=2.0):
    """states: (B, T, state_dim) f32. Returns (means (B,T,A), scale (A,))."""
    B, T, S = states.shape
    w_ih, w_hh = params["w_ih"], params["w_hh"]
    b_ih, b_hh = params["b_ih"], params["b_hh"]
    w_dense, b_dense, log_stds = (params["w_dense"], params["b_dense"],
                                  params["log_stds"])
    H = w_hh.shape[1]
    A = w_dense.shape[0]

    Hp = _round_up(H, 128)                  # lane-aligned gate slices
    Gp = 4 * Hp
    Bc = min(_round_up(B, 8), 256)          # batch tile (sublane multiple)
    Bp = _round_up(B, Bc)                   # padded batch, multiple of Bc

    # Time-major, batch-padded input (T, Bp, S).
    x_tm = jnp.transpose(states.astype(jnp.float32), (1, 0, 2))
    x_tm = jnp.pad(x_tm, ((0, 0), (0, Bp - B), (0, 0)))

    # PyTorch LSTM gate order: i, f, g, o. Fold the sigmoid argument scaling
    # (0.5) into the i/f/o columns + bias so the kernel needs a single tanh
    # per step; zero-pad each gate's H columns out to Hp (exact: padded units
    # keep c = h = 0 forever).
    gate_scale = jnp.concatenate([
        jnp.full((H,), 0.5), jnp.full((H,), 0.5),
        jnp.ones((H,)), jnp.full((H,), 0.5)]).astype(jnp.float32)

    def pack_gates(w):                      # (rows, 4H) -> (rows, 4*Hp)
        r = w.shape[0]
        w = (w * gate_scale[None, :]).reshape(r, 4, H)
        w = jnp.pad(w, ((0, 0), (0, 0), (0, Hp - H)))
        return w.reshape(r, Gp)

    wih_p = pack_gates(jnp.transpose(w_ih).astype(jnp.float32)
                       ).astype(jnp.bfloat16)                          # (S, Gp)
    whh_p = pack_gates(jnp.transpose(w_hh).astype(jnp.float32))        # (H, Gp)
    whh_p = jnp.pad(whh_p, ((0, Hp - H), (0, 0))).astype(jnp.bfloat16)  # (Hp, Gp)
    b_p = pack_gates((b_ih + b_hh).astype(jnp.float32).reshape(1, 4 * H))  # (1, Gp) f32

    wd_p = jnp.pad(jnp.transpose(w_dense).astype(jnp.float32),
                   ((0, Hp - H), (0, 0))).astype(jnp.bfloat16)         # (Hp, A)
    bd = b_dense.reshape(1, A).astype(jnp.float32)

    kernel = functools.partial(_actor_kernel, T=T, Bc=Bc, Hp=Hp)

    out = pl.pallas_call(
        kernel,
        out_shape=jax.ShapeDtypeStruct((T, Bp, A), jnp.float32),
        grid=(Bp // Bc,),
        in_specs=[
            pl.BlockSpec((T, Bc, S), lambda b: (0, b, 0)),   # x batch chunk
            pl.BlockSpec((S, Gp), lambda b: (0, 0)),         # W_ih (resident)
            pl.BlockSpec((Hp, Gp), lambda b: (0, 0)),        # W_hh (resident)
            pl.BlockSpec((1, Gp), lambda b: (0, 0)),         # gate bias
            pl.BlockSpec((Hp, A), lambda b: (0, 0)),         # dense weight
            pl.BlockSpec((1, A), lambda b: (0, 0)),          # dense bias
        ],
        out_specs=pl.BlockSpec((T, Bc, A), lambda b: (0, b, 0)),
        scratch_shapes=[pltpu.VMEM((T * Bc, Gp), jnp.bfloat16),
                        pltpu.VMEM((T * Bc, Hp), jnp.bfloat16)],
        compiler_params=pltpu.CompilerParams(
            dimension_semantics=("parallel",)),
    )(x_tm, wih_p, whh_p, b_p, wd_p, bd)

    means = jnp.transpose(out[:, :B, :], (1, 0, 2))          # (B, T, A)

    # scale is independent of the recurrence -> plain JAX in the wrapper.
    scale = jnp.exp(jnp.clip(log_stds.astype(jnp.float32),
                             log_std_min, log_std_max))
    return means, scale


def actor_forward_ref(states, params, log_std_min=-10.0, log_std_max=2.0):
    """Pure-JAX f32 reference (lax.scan LSTM) for correctness checking."""
    w_ih, w_hh, b_ih, b_hh = (params["w_ih"], params["w_hh"],
                              params["b_ih"], params["b_hh"])
    w_dense, b_dense, log_stds = (params["w_dense"], params["b_dense"],
                                  params["log_stds"])
    H = w_hh.shape[1]
    B = states.shape[0]

    def cell(carry, x_t):
        h, c = carry
        gates = x_t @ w_ih.T + b_ih + h @ w_hh.T + b_hh
        i = jax.nn.sigmoid(gates[:, 0:H])
        f = jax.nn.sigmoid(gates[:, H:2 * H])
        g = jnp.tanh(gates[:, 2 * H:3 * H])
        o = jax.nn.sigmoid(gates[:, 3 * H:4 * H])
        c = f * c + i * g
        h = o * jnp.tanh(c)
        return (h, c), h

    h0 = jnp.zeros((B, H), jnp.float32)
    _, hs = lax.scan(cell, (h0, h0), jnp.transpose(states, (1, 0, 2)))  # (T,B,H)
    outputs = jnp.transpose(hs, (1, 0, 2))                               # (B,T,H)
    means = jnp.tanh(outputs @ w_dense.T + b_dense)
    scale = jnp.exp(jnp.clip(log_stds, log_std_min, log_std_max))
    return means, scale


def init_params(key, state_dim, action_dim, hidden_dim):
    """Deterministic synthetic init mirroring the PyTorch module's shapes."""
    ks = jax.random.split(key, 6)
    bound = 1.0 / jnp.sqrt(hidden_dim)
    u = lambda k, shape: jax.random.uniform(k, shape, jnp.float32, -bound, bound)
    return {
        "w_ih": u(ks[0], (4 * hidden_dim, state_dim)),
        "w_hh": u(ks[1], (4 * hidden_dim, hidden_dim)),
        "b_ih": u(ks[2], (4 * hidden_dim,)),
        "b_hh": u(ks[3], (4 * hidden_dim,)),
        "w_dense": u(ks[4], (action_dim, hidden_dim)),
        "b_dense": u(ks[5], (action_dim,)),
        # nn.Parameter(torch.zeros(action_dim))
        "log_stds": jnp.zeros((action_dim,), jnp.float32),
        # TODO(synk): state_dependent_std_dense is initialized in the PyTorch
        # module but never used in forward(); omitted here.
    }


if __name__ == "__main__":
    B, T = 2, 8
    state_dim, action_dim, hidden_dim = 16, 4, 32

    key = jax.random.PRNGKey(0)
    k_param, k_x = jax.random.split(key)
    params = init_params(k_param, state_dim, action_dim, hidden_dim)
    states = jax.random.normal(k_x, (B, T, state_dim), jnp.float32)

    means, scale = jax.jit(actor_forward)(states, params)
    jax.block_until_ready((means, scale))

    means_ref, scale_ref = actor_forward_ref(states, params)
    assert means.shape == (B, T, action_dim)
    assert scale.shape == (action_dim,)
    # bf16 MXU operands (f32 accumulation, f32 state) -> ~bf16-level tolerance.
    assert jnp.allclose(means, means_ref, atol=2e-2, rtol=2e-2)
    assert jnp.allclose(scale, scale_ref, atol=1e-5, rtol=1e-5)

    print("KERNEL_OK")
</pallas_src>

<mosaic_0001>
module attributes {stable_mosaic.version = 11 : i64} {
  func.func @_actor_kernel(%arg0: i32, %arg1: memref<8x8x16xf32, #tpu.memory_space<vmem>>, %arg2: memref<16x512xbf16, #tpu.memory_space<vmem>>, %arg3: memref<128x512xbf16, #tpu.memory_space<vmem>>, %arg4: memref<1x512xf32, #tpu.memory_space<vmem>>, %arg5: memref<128x4xbf16, #tpu.memory_space<vmem>>, %arg6: memref<1x4xf32, #tpu.memory_space<vmem>>, %arg7: memref<8x8x4xf32, #tpu.memory_space<vmem>>, %arg8: memref<64x512xbf16, #tpu.memory_space<vmem>>, %arg9: memref<64x128xbf16, #tpu.memory_space<vmem>>) attributes {dimension_semantics = [#tpu.dimension_semantics<parallel>], iteration_bounds = array<i64: 1>, scalar_prefetch = 0 : i64, scratch_operands = 2 : i64, tpu.core_type = #tpu.core_type<tc>, window_params = [{transform_indices = @transform_0, window_bounds = array<i64: 8, 8, 16>}, {pipeline_mode = #tpu.pipeline_mode<synchronous>, transform_indices = @transform_1, window_bounds = array<i64: 16, 512>}, {pipeline_mode = #tpu.pipeline_mode<synchronous>, transform_indices = @transform_2, window_bounds = array<i64: 128, 512>}, {pipeline_mode = #tpu.pipeline_mode<synchronous>, transform_indices = @transform_3, window_bounds = array<i64: 1, 512>}, {pipeline_mode = #tpu.pipeline_mode<synchronous>, transform_indices = @transform_4, window_bounds = array<i64: 128, 4>}, {pipeline_mode = #tpu.pipeline_mode<synchronous>, transform_indices = @transform_5, window_bounds = array<i64: 1, 4>}, {transform_indices = @transform_6, window_bounds = array<i64: 8, 8, 4>}]} {
    %c0 = arith.constant 0 : index
    %c0_0 = arith.constant 0 : index
    %c0_1 = arith.constant 0 : index
    %0 = vector.load %arg1[%c0, %c0_0, %c0_1] : memref<8x8x16xf32, #tpu.memory_space<vmem>>, vector<8x8x16xf32>
    %1 = vector.shape_cast %0 : vector<8x8x16xf32> to vector<64x16xf32>
    %2 = arith.truncf %1 : vector<64x16xf32> to vector<64x16xbf16>
    %c0_2 = arith.constant 0 : index
    %c0_3 = arith.constant 0 : index
    %3 = vector.load %arg2[%c0_2, %c0_3] : memref<16x512xbf16, #tpu.memory_space<vmem>>, vector<16x512xbf16>
    %cst = arith.constant dense<0.000000e+00> : vector<64x512xf32>
    %4 = tpu.matmul %2, %3, %cst {dimension_numbers = #tpu.dot_dimension_numbers<[1], [0], [0], [1], [0, 0, 1, 1], [], []>} : vector<64x16xbf16>, vector<16x512xbf16>, vector<64x512xf32> -> vector<64x512xf32>
    %c0_4 = arith.constant 0 : index
    %c0_5 = arith.constant 0 : index
    %5 = vector.load %arg4[%c0_4, %c0_5] : memref<1x512xf32, #tpu.memory_space<vmem>>, vector<1x512xf32>
    %6 = vector.broadcast %5 : vector<1x512xf32> to vector<64x512xf32>
    %7 = arith.addf %4, %6 : vector<64x512xf32>
    %8 = arith.truncf %7 : vector<64x512xf32> to vector<64x512xbf16>
    %c0_6 = arith.constant 0 : index
    %c0_7 = arith.constant 0 : index
    %9 = vector.load %arg8[%c0_6, %c0_7] : memref<64x512xbf16, #tpu.memory_space<vmem>>, vector<64x512xbf16>
    tpu.vector_store %arg8[%c0_6, %c0_7], %8 {strides = array<i32>} : memref<64x512xbf16, #tpu.memory_space<vmem>>, vector<64x512xbf16>,
    %cst_8 = arith.constant 0.000000e+00 : f32
    %10 = vector.broadcast %cst_8 : f32 to vector<8x128xf32>
    %cst_9 = arith.constant 0.000000e+00 : f32
    %11 = vector.broadcast %cst_9 : f32 to vector<8x128xf32>
    %c0_i32 = arith.constant 0 : i32
    %c8_i32 = arith.constant 8 : i32
    %12 = arith.muli %c0_i32, %c8_i32 : i32
    %13 = tpu.assume_multiple %12, 8 : i32
    %14 = arith.index_cast %13 : i32 to index
    %c0_10 = arith.constant 0 : index
    %15 = vector.load %arg8[%14, %c0_10] : memref<64x512xbf16, #tpu.memory_space<vmem>>, vector<8x512xbf16>
    %16 = arith.extf %15 : vector<8x512xbf16> to vector<8x512xf32>
    %17 = arith.truncf %10 : vector<8x128xf32> to vector<8x128xbf16>
    %c0_11 = arith.constant 0 : index
    %c0_12 = arith.constant 0 : index
    %18 = vector.load %arg3[%c0_11, %c0_12] : memref<128x512xbf16, #tpu.memory_space<vmem>>, vector<128x512xbf16>
    %cst_13 = arith.constant dense<0.000000e+00> : vector<8x512xf32>
    %19 = tpu.matmul %17, %18, %cst_13 {dimension_numbers = #tpu.dot_dimension_numbers<[1], [0], [0], [1], [0, 0, 1, 1], [], []>} : vector<8x128xbf16>, vector<128x512xbf16>, vector<8x512xf32> -> vector<8x512xf32>
    %20 = arith.addf %16, %19 : vector<8x512xf32>
    %21 = math.tanh %20 : vector<8x512xf32>
    %22 = vector.extract_strided_slice %21 {offsets = [0, 0], sizes = [8, 128], strides = [1, 1]} : vector<8x512xf32> to vector<8x128xf32>
    %cst_14 = arith.constant 1.000000e+00 : f32
    %23 = vector.broadcast %cst_14 : f32 to vector<8x128xf32>
    %24 = arith.addf %22, %23 : vector<8x128xf32>
    %cst_15 = arith.constant 5.000000e-01 : f32
    %25 = vector.broadcast %cst_15 : f32 to vector<8x128xf32>
    %26 = arith.mulf %25, %24 : vector<8x128xf32>
    %27 = vector.extract_strided_slice %21 {offsets = [0, 128], sizes = [8, 128], strides = [1, 1]} : vector<8x512xf32> to vector<8x128xf32>
    %cst_16 = arith.constant 1.000000e+00 : f32
    %28 = vector.broadcast %cst_16 : f32 to vector<8x128xf32>
    %29 = arith.addf %27, %28 : vector<8x128xf32>
    %cst_17 = arith.constant 5.000000e-01 : f32
    %30 = vector.broadcast %cst_17 : f32 to vector<8x128xf32>
    %31 = arith.mulf %30, %29 : vector<8x128xf32>
    %32 = vector.extract_strided_slice %21 {offsets = [0, 256], sizes = [8, 128], strides = [1, 1]} : vector<8x512xf32> to vector<8x128xf32>
    %33 = vector.extract_strided_slice %21 {offsets = [0, 384], sizes = [8, 128], strides = [1, 1]} : vector<8x512xf32> to vector<8x128xf32>
    %cst_18 = arith.constant 1.000000e+00 : f32
    %34 = vector.broadcast %cst_18 : f32 to vector<8x128xf32>
    %35 = arith.addf %33, %34 : vector<8x128xf32>
    %cst_19 = arith.constant 5.000000e-01 : f32
    %36 = vector.broadcast %cst_19 : f32 to vector<8x128xf32>
    %37 = arith.mulf %36, %35 : vector<8x128xf32>
    %38 = arith.mulf %31, %11 : vector<8x128xf32>
    %39 = arith.mulf %26, %32 : vector<8x128xf32>
    %40 = arith.addf %38, %39 : vector<8x128xf32>
    %41 = math.tanh %40 : vector<8x128xf32>
    %42 = arith.mulf %37, %41 : vector<8x128xf32>
    %43 = arith.truncf %42 : vector<8x128xf32> to vector<8x128xbf16>
    %44 = arith.index_cast %13 : i32 to index
    %c0_20 = arith.constant 0 : index
    %45 = vector.load %arg9[%44, %c0_20] : memref<64x128xbf16, #tpu.memory_space<vmem>>, vector<8x128xbf16>
    tpu.vector_store %arg9[%44, %c0_20], %43 {strides = array<i32>} : memref<64x128xbf16, #tpu.memory_space<vmem>>, vector<8x128xbf16>,
    %c1_i32 = arith.constant 1 : i32
    %c8_i32_21 = arith.constant 8 : i32
    %46 = arith.muli %c1_i32, %c8_i32_21 : i32
    %47 = tpu.assume_multiple %46, 8 : i32
    %48 = arith.index_cast %47 : i32 to index
    %c0_22 = arith.constant 0 : index
    %49 = vector.load %arg8[%48, %c0_22] : memref<64x512xbf16, #tpu.memory_space<vmem>>, vector<8x512xbf16>
    %50 = arith.extf %49 : vector<8x512xbf16> to vector<8x512xf32>
    %51 = arith.truncf %42 : vector<8x128xf32> to vector<8x128xbf16>
    %c0_23 = arith.constant 0 : index
    %c0_24 = arith.constant 0 : index
    %52 = vector.load %arg3[%c0_23, %c0_24] : memref<128x512xbf16, #tpu.memory_space<vmem>>, vector<128x512xbf16>
    %cst_25 = arith.constant dense<0.000000e+00> : vector<8x512xf32>
    %53 = tpu.matmul %51, %52, %cst_25 {dimension_numbers = #tpu.dot_dimension_numbers<[1], [0], [0], [1], [0, 0, 1, 1], [], []>} : vector<8x128xbf16>, vector<128x512xbf16>, vector<8x512xf32> -> vector<8x512xf32>
    %54 = arith.addf %50, %53 : vector<8x512xf32>
    %55 = math.tanh %54 : vector<8x512xf32>
    %56 = vector.extract_strided_slice %55 {offsets = [0, 0], sizes = [8, 128], strides = [1, 1]} : vector<8x512xf32> to vector<8x128xf32>
    %cst_26 = arith.constant 1.000000e+00 : f32
    %57 = vector.broadcast %cst_26 : f32 to vector<8x128xf32>
    %58 = arith.addf %56, %57 : vector<8x128xf32>
    %cst_27 = arith.constant 5.000000e-01 : f32
    %59 = vector.broadcast %cst_27 : f32 to vector<8x128xf32>
    %60 = arith.mulf %59, %58 : vector<8x128xf32>
    %61 = vector.extract_strided_slice %55 {offsets = [0, 128], sizes = [8, 128], strides = [1, 1]} : vector<8x512xf32> to vector<8x128xf32>
    %cst_28 = arith.constant 1.000000e+00 : f32
    %62 = vector.broadcast %cst_28 : f32 to vector<8x128xf32>
    %63 = arith.addf %61, %62 : vector<8x128xf32>
    %cst_29 = arith.constant 5.000000e-01 : f32
    %64 = vector.broadcast %cst_29 : f32 to vector<8x128xf32>
    %65 = arith.mulf %64, %63 : vector<8x128xf32>
    %66 = vector.extract_strided_slice %55 {offsets = [0, 256], sizes = [8, 128], strides = [1, 1]} : vector<8x512xf32> to vector<8x128xf32>
    %67 = vector.extract_strided_slice %55 {offsets = [0, 384], sizes = [8, 128], strides = [1, 1]} : vector<8x512xf32> to vector<8x128xf32>
    %cst_30 = arith.constant 1.000000e+00 : f32
    %68 = vector.broadcast %cst_30 : f32 to vector<8x128xf32>
    %69 = arith.addf %67, %68 : vector<8x128xf32>
    %cst_31 = arith.constant 5.000000e-01 : f32
    %70 = vector.broadcast %cst_31 : f32 to vector<8x128xf32>
    %71 = arith.mulf %70, %69 : vector<8x128xf32>
    %72 = arith.mulf %65, %40 : vector<8x128xf32>
    %73 = arith.mulf %60, %66 : vector<8x128xf32>
    %74 = arith.addf %72, %73 : vector<8x128xf32>
    %75 = math.tanh %74 : vector<8x128xf32>
    %76 = arith.mulf %71, %75 : vector<8x128xf32>
    %77 = arith.truncf %76 : vector<8x128xf32> to vector<8x128xbf16>
    %78 = arith.index_cast %47 : i32 to index
    %c0_32 = arith.constant 0 : index
    %79 = vector.load %arg9[%78, %c0_32] : memref<64x128xbf16, #tpu.memory_space<vmem>>, vector<8x128xbf16>
    tpu.vector_store %arg9[%78, %c0_32], %77 {strides = array<i32>} : memref<64x128xbf16, #tpu.memory_space<vmem>>, vector<8x128xbf16>,
    %c2_i32 = arith.constant 2 : i32
    %c8_i32_33 = arith.constant 8 : i32
    %80 = arith.muli %c2_i32, %c8_i32_33 : i32
    %81 = tpu.assume_multiple %80, 8 : i32
    %82 = arith.index_cast %81 : i32 to index
    %c0_34 = arith.constant 0 : index
    %83 = vector.load %arg8[%82, %c0_34] : memref<64x512xbf16, #tpu.memory_space<vmem>>, vector<8x512xbf16>
    %84 = arith.extf %83 : vector<8x512xbf16> to vector<8x512xf32>
    %85 = arith.truncf %76 : vector<8x128xf32> to vector<8x128xbf16>
    %c0_35 = arith.constant 0 : index
    %c0_36 = arith.constant 0 : index
    %86 = vector.load %arg3[%c0_35, %c0_36] : memref<128x512xbf16, #tpu.memory_space<vmem>>, vector<128x512xbf16>
    %cst_37 = arith.constant dense<0.000000e+00> : vector<8x512xf32>
    %87 = tpu.matmul %85, %86, %cst_37 {dimension_numbers = #tpu.dot_dimension_numbers<[1], [0], [0], [1], [0, 0, 1, 1], [], []>} : vector<8x128xbf16>, vector<128x512xbf16>, vector<8x512xf32> -> vector<8x512xf32>
    %88 = arith.addf %84, %87 : vector<8x512xf32>
    %89 = math.tanh %88 : vector<8x512xf32>
    %90 = vector.extract_strided_slice %89 {offsets = [0, 0], sizes = [8, 128], strides = [1, 1]} : vector<8x512xf32> to vector<8x128xf32>
    %cst_38 = arith.constant 1.000000e+00 : f32
    %91 = vector.broadcast %cst_38 : f32 to vector<8x128xf32>
    %92 = arith.addf %90, %91 : vector<8x128xf32>
    %cst_39 = arith.constant 5.000000e-01 : f32
    %93 = vector.broadcast %cst_39 : f32 to vector<8x128xf32>
    %94 = arith.mulf %93, %92 : vector<8x128xf32>
    %95 = vector.extract_strided_slice %89 {offsets = [0, 128], sizes = [8, 128], strides = [1, 1]} : vector<8x512xf32> to vector<8x128xf32>
    %cst_40 = arith.constant 1.000000e+00 : f32
    %96 = vector.broadcast %cst_40 : f32 to vector<8x128xf32>
    %97 = arith.addf %95, %96 : vector<8x128xf32>
    %cst_41 = arith.constant 5.000000e-01 : f32
    %98 = vector.broadcast %cst_41 : f32 to vector<8x128xf32>
    %99 = arith.mulf %98, %97 : vector<8x128xf32>
    %100 = vector.extract_strided_slice %89 {offsets = [0, 256], sizes = [8, 128], strides = [1, 1]} : vector<8x512xf32> to vector<8x128xf32>
    %101 = vector.extract_strided_slice %89 {offsets = [0, 384], sizes = [8, 128], strides = [1, 1]} : vector<8x512xf32> to vector<8x128xf32>
    %cst_42 = arith.constant 1.000000e+00 : f32
    %102 = vector.broadcast %cst_42 : f32 to vector<8x128xf32>
    %103 = arith.addf %101, %102 : vector<8x128xf32>
    %cst_43 = arith.constant 5.000000e-01 : f32
    %104 = vector.broadcast %cst_43 : f32 to vector<8x128xf32>
    %105 = arith.mulf %104, %103 : vector<8x128xf32>
    %106 = arith.mulf %99, %74 : vector<8x128xf32>
    %107 = arith.mulf %94, %100 : vector<8x128xf32>
    %108 = arith.addf %106, %107 : vector<8x128xf32>
    %109 = math.tanh %108 : vector<8x128xf32>
    %110 = arith.mulf %105, %109 : vector<8x128xf32>
    %111 = arith.truncf %110 : vector<8x128xf32> to vector<8x128xbf16>
    %112 = arith.index_cast %81 : i32 to index
    %c0_44 = arith.constant 0 : index
    %113 = vector.load %arg9[%112, %c0_44] : memref<64x128xbf16, #tpu.memory_space<vmem>>, vector<8x128xbf16>
    tpu.vector_store %arg9[%112, %c0_44], %111 {strides = array<i32>} : memref<64x128xbf16, #tpu.memory_space<vmem>>, vector<8x128xbf16>,
    %c3_i32 = arith.constant 3 : i32
    %c8_i32_45 = arith.constant 8 : i32
    %114 = arith.muli %c3_i32, %c8_i32_45 : i32
    %115 = tpu.assume_multiple %114, 8 : i32
    %116 = arith.index_cast %115 : i32 to index
    %c0_46 = arith.constant 0 : index
    %117 = vector.load %arg8[%116, %c0_46] : memref<64x512xbf16, #tpu.memory_space<vmem>>, vector<8x512xbf16>
    %118 = arith.extf %117 : vector<8x512xbf16> to vector<8x512xf32>
    %119 = arith.truncf %110 : vector<8x128xf32> to vector<8x128xbf16>
    %c0_47 = arith.constant 0 : index
    %c0_48 = arith.constant 0 : index
    %120 = vector.load %arg3[%c0_47, %c0_48] : memref<128x512xbf16, #tpu.memory_space<vmem>>, vector<128x512xbf16>
    %cst_49 = arith.constant dense<0.000000e+00> : vector<8x512xf32>
    %121 = tpu.matmul %119, %120, %cst_49 {dimension_numbers = #tpu.dot_dimension_numbers<[1], [0], [0], [1], [0, 0, 1, 1], [], []>} : vector<8x128xbf16>, vector<128x512xbf16>, vector<8x512xf32> -> vector<8x512xf32>
    %122 = arith.addf %118, %121 : vector<8x512xf32>
    %123 = math.tanh %122 : vector<8x512xf32>
    %124 = vector.extract_strided_slice %123 {offsets = [0, 0], sizes = [8, 128], strides = [1, 1]} : vector<8x512xf32> to vector<8x128xf32>
    %cst_50 = arith.constant 1.000000e+00 : f32
    %125 = vector.broadcast %cst_50 : f32 to vector<8x128xf32>
    %126 = arith.addf %124, %125 : vector<8x128xf32>
    %cst_51 = arith.constant 5.000000e-01 : f32
    %127 = vector.broadcast %cst_51 : f32 to vector<8x128xf32>
    %128 = arith.mulf %127, %126 : vector<8x128xf32>
    %129 = vector.extract_strided_slice %123 {offsets = [0, 128], sizes = [8, 128], strides = [1, 1]} : vector<8x512xf32> to vector<8x128xf32>
    %cst_52 = arith.constant 1.000000e+00 : f32
    %130 = vector.broadcast %cst_52 : f32 to vector<8x128xf32>
    %131 = arith.addf %129, %130 : vector<8x128xf32>
    %cst_53 = arith.constant 5.000000e-01 : f32
    %132 = vector.broadcast %cst_53 : f32 to vector<8x128xf32>
    %133 = arith.mulf %132, %131 : vector<8x128xf32>
    %134 = vector.extract_strided_slice %123 {offsets = [0, 256], sizes = [8, 128], strides = [1, 1]} : vector<8x512xf32> to vector<8x128xf32>
    %135 = vector.extract_strided_slice %123 {offsets = [0, 384], sizes = [8, 128], strides = [1, 1]} : vector<8x512xf32> to vector<8x128xf32>
    %cst_54 = arith.constant 1.000000e+00 : f32
    %136 = vector.broadcast %cst_54 : f32 to vector<8x128xf32>
    %137 = arith.addf %135, %136 : vector<8x128xf32>
    %cst_55 = arith.constant 5.000000e-01 : f32
    %138 = vector.broadcast %cst_55 : f32 to vector<8x128xf32>
    %139 = arith.mulf %138, %137 : vector<8x128xf32>
    %140 = arith.mulf %133, %108 : vector<8x128xf32>
    %141 = arith.mulf %128, %134 : vector<8x128xf32>
    %142 = arith.addf %140, %141 : vector<8x128xf32>
    %143 = math.tanh %142 : vector<8x128xf32>
    %144 = arith.mulf %139, %143 : vector<8x128xf32>
    %145 = arith.truncf %144 : vector<8x128xf32> to vector<8x128xbf16>
    %146 = arith.index_cast %115 : i32 to index
    %c0_56 = arith.constant 0 : index
    %147 = vector.load %arg9[%146, %c0_56] : memref<64x128xbf16, #tpu.memory_space<vmem>>, vector<8x128xbf16>
    tpu.vector_store %arg9[%146, %c0_56], %145 {strides = array<i32>} : memref<64x128xbf16, #tpu.memory_space<vmem>>, vector<8x128xbf16>,
    %c4_i32 = arith.constant 4 : i32
    %c8_i32_57 = arith.constant 8 : i32
    %148 = arith.muli %c4_i32, %c8_i32_57 : i32
    %149 = tpu.assume_multiple %148, 8 : i32
    %150 = arith.index_cast %149 : i32 to index
    %c0_58 = arith.constant 0 : index
    %151 = vector.load %arg8[%150, %c0_58] : memref<64x512xbf16, #tpu.memory_space<vmem>>, vector<8x512xbf16>
    %152 = arith.extf %151 : vector<8x512xbf16> to vector<8x512xf32>
    %153 = arith.truncf %144 : vector<8x128xf32> to vector<8x128xbf16>
    %c0_59 = arith.constant 0 : index
    %c0_60 = arith.constant 0 : index
    %154 = vector.load %arg3[%c0_59, %c0_60] : memref<128x512xbf16, #tpu.memory_space<vmem>>, vector<128x512xbf16>
    %cst_61 = arith.constant dense<0.000000e+00> : vector<8x512xf32>
    %155 = tpu.matmul %153, %154, %cst_61 {dimension_numbers = #tpu.dot_dimension_numbers<[1], [0], [0], [1], [0, 0, 1, 1], [], []>} : vector<8x128xbf16>, vector<128x512xbf16>, vector<8x512xf32> -> vector<8x512xf32>
    %156 = arith.addf %152, %155 : vector<8x512xf32>
    %157 = math.tanh %156 : vector<8x512xf32>
    %158 = vector.extract_strided_slice %157 {offsets = [0, 0], sizes = [8, 128], strides = [1, 1]} : vector<8x512xf32> to vector<8x128xf32>
    %cst_62 = arith.constant 1.000000e+00 : f32
    %159 = vector.broadcast %cst_62 : f32 to vector<8x128xf32>
    %160 = arith.addf %158, %159 : vector<8x128xf32>
    %cst_63 = arith.constant 5.000000e-01 : f32
    %161 = vector.broadcast %cst_63 : f32 to vector<8x128xf32>
    %162 = arith.mulf %161, %160 : vector<8x128xf32>
    %163 = vector.extract_strided_slice %157 {offsets = [0, 128], sizes = [8, 128], strides = [1, 1]} : vector<8x512xf32> to vector<8x128xf32>
    %cst_64 = arith.constant 1.000000e+00 : f32
    %164 = vector.broadcast %cst_64 : f32 to vector<8x128xf32>
    %165 = arith.addf %163, %164 : vector<8x128xf32>
    %cst_65 = arith.constant 5.000000e-01 : f32
    %166 = vector.broadcast %cst_65 : f32 to vector<8x128xf32>
    %167 = arith.mulf %166, %165 : vector<8x128xf32>
    %168 = vector.extract_strided_slice %157 {offsets = [0, 256], sizes = [8, 128], strides = [1, 1]} : vector<8x512xf32> to vector<8x128xf32>
    %169 = vector.extract_strided_slice %157 {offsets = [0, 384], sizes = [8, 128], strides = [1, 1]} : vector<8x512xf32> to vector<8x128xf32>
    %cst_66 = arith.constant 1.000000e+00 : f32
    %170 = vector.broadcast %cst_66 : f32 to vector<8x128xf32>
    %171 = arith.addf %169, %170 : vector<8x128xf32>
    %cst_67 = arith.constant 5.000000e-01 : f32
    %172 = vector.broadcast %cst_67 : f32 to vector<8x128xf32>
    %173 = arith.mulf %172, %171 : vector<8x128xf32>
    %174 = arith.mulf %167, %142 : vector<8x128xf32>
    %175 = arith.mulf %162, %168 : vector<8x128xf32>
    %176 = arith.addf %174, %175 : vector<8x128xf32>
    %177 = math.tanh %176 : vector<8x128xf32>
    %178 = arith.mulf %173, %177 : vector<8x128xf32>
    %179 = arith.truncf %178 : vector<8x128xf32> to vector<8x128xbf16>
    %180 = arith.index_cast %149 : i32 to index
    %c0_68 = arith.constant 0 : index
    %181 = vector.load %arg9[%180, %c0_68] : memref<64x128xbf16, #tpu.memory_space<vmem>>, vector<8x128xbf16>
    tpu.vector_store %arg9[%180, %c0_68], %179 {strides = array<i32>} : memref<64x128xbf16, #tpu.memory_space<vmem>>, vector<8x128xbf16>,
    %c5_i32 = arith.constant 5 : i32
    %c8_i32_69 = arith.constant 8 : i32
    %182 = arith.muli %c5_i32, %c8_i32_69 : i32
    %183 = tpu.assume_multiple %182, 8 : i32
    %184 = arith.index_cast %183 : i32 to index
    %c0_70 = arith.constant 0 : index
    %185 = vector.load %arg8[%184, %c0_70] : memref<64x512xbf16, #tpu.memory_space<vmem>>, vector<8x512xbf16>
    %186 = arith.extf %185 : vector<8x512xbf16> to vector<8x512xf32>
    %187 = arith.truncf %178 : vector<8x128xf32> to vector<8x128xbf16>
    %c0_71 = arith.constant 0 : index
    %c0_72 = arith.constant 0 : index
    %188 = vector.load %arg3[%c0_71, %c0_72] : memref<128x512xbf16, #tpu.memory_space<vmem>>, vector<128x512xbf16>
    %cst_73 = arith.constant dense<0.000000e+00> : vector<8x512xf32>
    %189 = tpu.matmul %187, %188, %cst_73 {dimension_numbers = #tpu.dot_dimension_numbers<[1], [0], [0], [1], [0, 0, 1, 1], [], []>} : vector<8x128xbf16>, vector<128x512xbf16>, vector<8x512xf32> -> vector<8x512xf32>
    %190 = arith.addf %186, %189 : vector<8x512xf32>
    %191 = math.tanh %190 : vector<8x512xf32>
    %192 = vector.extract_strided_slice %191 {offsets = [0, 0], sizes = [8, 128], strides = [1, 1]} : vector<8x512xf32> to vector<8x128xf32>
    %cst_74 = arith.constant 1.000000e+00 : f32
    %193 = vector.broadcast %cst_74 : f32 to vector<8x128xf32>
    %194 = arith.addf %192, %193 : vector<8x128xf32>
    %cst_75 = arith.constant 5.000000e-01 : f32
    %195 = vector.broadcast %cst_75 : f32 to vector<8x128xf32>
    %196 = arith.mulf %195, %194 : vector<8x128xf32>
    %197 = vector.extract_strided_slice %191 {offsets = [0, 128], sizes = [8, 128], strides = [1, 1]} : vector<8x512xf32> to vector<8x128xf32>
    %cst_76 = arith.constant 1.000000e+00 : f32
    %198 = vector.broadcast %cst_76 : f32 to vector<8x128xf32>
    %199 = arith.addf %197, %198 : vector<8x128xf32>
    %cst_77 = arith.constant 5.000000e-01 : f32
    %200 = vector.broadcast %cst_77 : f32 to vector<8x128xf32>
    %201 = arith.mulf %200, %199 : vector<8x128xf32>
    %202 = vector.extract_strided_slice %191 {offsets = [0, 256], sizes = [8, 128], strides = [1, 1]} : vector<8x512xf32> to vector<8x128xf32>
    %203 = vector.extract_strided_slice %191 {offsets = [0, 384], sizes = [8, 128], strides = [1, 1]} : vector<8x512xf32> to vector<8x128xf32>
    %cst_78 = arith.constant 1.000000e+00 : f32
    %204 = vector.broadcast %cst_78 : f32 to vector<8x128xf32>
    %205 = arith.addf %203, %204 : vector<8x128xf32>
    %cst_79 = arith.constant 5.000000e-01 : f32
    %206 = vector.broadcast %cst_79 : f32 to vector<8x128xf32>
    %207 = arith.mulf %206, %205 : vector<8x128xf32>
    %208 = arith.mulf %201, %176 : vector<8x128xf32>
    %209 = arith.mulf %196, %202 : vector<8x128xf32>
    %210 = arith.addf %208, %209 : vector<8x128xf32>
    %211 = math.tanh %210 : vector<8x128xf32>
    %212 = arith.mulf %207, %211 : vector<8x128xf32>
    %213 = arith.truncf %212 : vector<8x128xf32> to vector<8x128xbf16>
    %214 = arith.index_cast %183 : i32 to index
    %c0_80 = arith.constant 0 : index
    %215 = vector.load %arg9[%214, %c0_80] : memref<64x128xbf16, #tpu.memory_space<vmem>>, vector<8x128xbf16>
    tpu.vector_store %arg9[%214, %c0_80], %213 {strides = array<i32>} : memref<64x128xbf16, #tpu.memory_space<vmem>>, vector<8x128xbf16>,
    %c6_i32 = arith.constant 6 : i32
    %c8_i32_81 = arith.constant 8 : i32
    %216 = arith.muli %c6_i32, %c8_i32_81 : i32
    %217 = tpu.assume_multiple %216, 8 : i32
    %218 = arith.index_cast %217 : i32 to index
    %c0_82 = arith.constant 0 : index
    %219 = vector.load %arg8[%218, %c0_82] : memref<64x512xbf16, #tpu.memory_space<vmem>>, vector<8x512xbf16>
    %220 = arith.extf %219 : vector<8x512xbf16> to vector<8x512xf32>
    %221 = arith.truncf %212 : vector<8x128xf32> to vector<8x128xbf16>
    %c0_83 = arith.constant 0 : index
    %c0_84 = arith.constant 0 : index
    %222 = vector.load %arg3[%c0_83, %c0_84] : memref<128x512xbf16, #tpu.memory_space<vmem>>, vector<128x512xbf16>
    %cst_85 = arith.constant dense<0.000000e+00> : vector<8x512xf32>
    %223 = tpu.matmul %221, %222, %cst_85 {dimension_numbers = #tpu.dot_dimension_numbers<[1], [0], [0], [1], [0, 0, 1, 1], [], []>} : vector<8x128xbf16>, vector<128x512xbf16>, vector<8x512xf32> -> vector<8x512xf32>
    %224 = arith.addf %220, %223 : vector<8x512xf32>
    %225 = math.tanh %224 : vector<8x512xf32>
    %226 = vector.extract_strided_slice %225 {offsets = [0, 0], sizes = [8, 128], strides = [1, 1]} : vector<8x512xf32> to vector<8x128xf32>
    %cst_86 = arith.constant 1.000000e+00 : f32
    %227 = vector.broadcast %cst_86 : f32 to vector<8x128xf32>
    %228 = arith.addf %226, %227 : vector<8x128xf32>
    %cst_87 = arith.constant 5.000000e-01 : f32
    %229 = vector.broadcast %cst_87 : f32 to vector<8x128xf32>
    %230 = arith.mulf %229, %228 : vector<8x128xf32>
    %231 = vector.extract_strided_slice %225 {offsets = [0, 128], sizes = [8, 128], strides = [1, 1]} : vector<8x512xf32> to vector<8x128xf32>
    %cst_88 = arith.constant 1.000000e+00 : f32
    %232 = vector.broadcast %cst_88 : f32 to vector<8x128xf32>
    %233 = arith.addf %231, %232 : vector<8x128xf32>
    %cst_89 = arith.constant 5.000000e-01 : f32
    %234 = vector.broadcast %cst_89 : f32 to vector<8x128xf32>
    %235 = arith.mulf %234, %233 : vector<8x128xf32>
    %236 = vector.extract_strided_slice %225 {offsets = [0, 256], sizes = [8, 128], strides = [1, 1]} : vector<8x512xf32> to vector<8x128xf32>
    %237 = vector.extract_strided_slice %225 {offsets = [0, 384], sizes = [8, 128], strides = [1, 1]} : vector<8x512xf32> to vector<8x128xf32>
    %cst_90 = arith.constant 1.000000e+00 : f32
    %238 = vector.broadcast %cst_90 : f32 to vector<8x128xf32>
    %239 = arith.addf %237, %238 : vector<8x128xf32>
    %cst_91 = arith.constant 5.000000e-01 : f32
    %240 = vector.broadcast %cst_91 : f32 to vector<8x128xf32>
    %241 = arith.mulf %240, %239 : vector<8x128xf32>
    %242 = arith.mulf %235, %210 : vector<8x128xf32>
    %243 = arith.mulf %230, %236 : vector<8x128xf32>
    %244 = arith.addf %242, %243 : vector<8x128xf32>
    %245 = math.tanh %244 : vector<8x128xf32>
    %246 = arith.mulf %241, %245 : vector<8x128xf32>
    %247 = arith.truncf %246 : vector<8x128xf32> to vector<8x128xbf16>
    %248 = arith.index_cast %217 : i32 to index
    %c0_92 = arith.constant 0 : index
    %249 = vector.load %arg9[%248, %c0_92] : memref<64x128xbf16, #tpu.memory_space<vmem>>, vector<8x128xbf16>
    tpu.vector_store %arg9[%248, %c0_92], %247 {strides = array<i32>} : memref<64x128xbf16, #tpu.memory_space<vmem>>, vector<8x128xbf16>,
    %c7_i32 = arith.constant 7 : i32
    %c8_i32_93 = arith.constant 8 : i32
    %250 = arith.muli %c7_i32, %c8_i32_93 : i32
    %251 = tpu.assume_multiple %250, 8 : i32
    %252 = arith.index_cast %251 : i32 to index
    %c0_94 = arith.constant 0 : index
    %253 = vector.load %arg8[%252, %c0_94] : memref<64x512xbf16, #tpu.memory_space<vmem>>, vector<8x512xbf16>
    %254 = arith.extf %253 : vector<8x512xbf16> to vector<8x512xf32>
    %255 = arith.truncf %246 : vector<8x128xf32> to vector<8x128xbf16>
    %c0_95 = arith.constant 0 : index
    %c0_96 = arith.constant 0 : index
    %256 = vector.load %arg3[%c0_95, %c0_96] : memref<128x512xbf16, #tpu.memory_space<vmem>>, vector<128x512xbf16>
    %cst_97 = arith.constant dense<0.000000e+00> : vector<8x512xf32>
    %257 = tpu.matmul %255, %256, %cst_97 {dimension_numbers = #tpu.dot_dimension_numbers<[1], [0], [0], [1], [0, 0, 1, 1], [], []>} : vector<8x128xbf16>, vector<128x512xbf16>, vector<8x512xf32> -> vector<8x512xf32>
    %258 = arith.addf %254, %257 : vector<8x512xf32>
    %259 = math.tanh %258 : vector<8x512xf32>
    %260 = vector.extract_strided_slice %259 {offsets = [0, 0], sizes = [8, 128], strides = [1, 1]} : vector<8x512xf32> to vector<8x128xf32>
    %cst_98 = arith.constant 1.000000e+00 : f32
    %261 = vector.broadcast %cst_98 : f32 to vector<8x128xf32>
    %262 = arith.addf %260, %261 : vector<8x128xf32>
    %cst_99 = arith.constant 5.000000e-01 : f32
    %263 = vector.broadcast %cst_99 : f32 to vector<8x128xf32>
    %264 = arith.mulf %263, %262 : vector<8x128xf32>
    %265 = vector.extract_strided_slice %259 {offsets = [0, 128], sizes = [8, 128], strides = [1, 1]} : vector<8x512xf32> to vector<8x128xf32>
    %cst_100 = arith.constant 1.000000e+00 : f32
    %266 = vector.broadcast %cst_100 : f32 to vector<8x128xf32>
    %267 = arith.addf %265, %266 : vector<8x128xf32>
    %cst_101 = arith.constant 5.000000e-01 : f32
    %268 = vector.broadcast %cst_101 : f32 to vector<8x128xf32>
    %269 = arith.mulf %268, %267 : vector<8x128xf32>
    %270 = vector.extract_strided_slice %259 {offsets = [0, 256], sizes = [8, 128], strides = [1, 1]} : vector<8x512xf32> to vector<8x128xf32>
    %271 = vector.extract_strided_slice %259 {offsets = [0, 384], sizes = [8, 128], strides = [1, 1]} : vector<8x512xf32> to vector<8x128xf32>
    %cst_102 = arith.constant 1.000000e+00 : f32
    %272 = vector.broadcast %cst_102 : f32 to vector<8x128xf32>
    %273 = arith.addf %271, %272 : vector<8x128xf32>
    %cst_103 = arith.constant 5.000000e-01 : f32
    %274 = vector.broadcast %cst_103 : f32 to vector<8x128xf32>
    %275 = arith.mulf %274, %273 : vector<8x128xf32>
    %276 = arith.mulf %269, %244 : vector<8x128xf32>
    %277 = arith.mulf %264, %270 : vector<8x128xf32>
    %278 = arith.addf %276, %277 : vector<8x128xf32>
    %279 = math.tanh %278 : vector<8x128xf32>
    %280 = arith.mulf %275, %279 : vector<8x128xf32>
    %281 = arith.truncf %280 : vector<8x128xf32> to vector<8x128xbf16>
    %282 = arith.index_cast %251 : i32 to index
    %c0_104 = arith.constant 0 : index
    %283 = vector.load %arg9[%282, %c0_104] : memref<64x128xbf16, #tpu.memory_space<vmem>>, vector<8x128xbf16>
    tpu.vector_store %arg9[%282, %c0_104], %281 {strides = array<i32>} : memref<64x128xbf16, #tpu.memory_space<vmem>>, vector<8x128xbf16>,
    %c8_i32_105 = arith.constant 8 : i32
    %c0_106 = arith.constant 0 : index
    %c0_107 = arith.constant 0 : index
    %284 = vector.load %arg9[%c0_106, %c0_107] : memref<64x128xbf16, #tpu.memory_space<vmem>>, vector<64x128xbf16>
    %c0_108 = arith.constant 0 : index
    %c0_109 = arith.constant 0 : index
    %285 = vector.load %arg5[%c0_108, %c0_109] : memref<128x4xbf16, #tpu.memory_space<vmem>>, vector<128x4xbf16>
    %cst_110 = arith.constant dense<0.000000e+00> : vector<64x4xf32>
    %286 = tpu.matmul %284, %285, %cst_110 {dimension_numbers = #tpu.dot_dimension_numbers<[1], [0], [0], [1], [0, 0, 1, 1], [], []>} : vector<64x128xbf16>, vector<128x4xbf16>, vector<64x4xf32> -> vector<64x4xf32>
    %c0_111 = arith.constant 0 : index
    %c0_112 = arith.constant 0 : index
    %287 = vector.load %arg6[%c0_111, %c0_112] : memref<1x4xf32, #tpu.memory_space<vmem>>, vector<1x4xf32>
    %288 = vector.broadcast %287 : vector<1x4xf32> to vector<64x4xf32>
    %289 = arith.addf %286, %288 : vector<64x4xf32>
    %290 = math.tanh %289 : vector<64x4xf32>
    %291 = vector.shape_cast %290 : vector<64x4xf32> to vector<8x8x4xf32>
    %c0_113 = arith.constant 0 : index
    %c0_114 = arith.constant 0 : index
    %c0_115 = arith.constant 0 : index
    %292 = vector.load %arg7[%c0_113, %c0_114, %c0_115] : memref<8x8x4xf32, #tpu.memory_space<vmem>>, vector<8x8x4xf32>
    tpu.vector_store %arg7[%c0_113, %c0_114, %c0_115], %291 {strides = array<i32>} : memref<8x8x4xf32, #tpu.memory_space<vmem>>, vector<8x8x4xf32>,
    return
  }
  func.func @transform_0(%arg0: i32) -> (i32, i32, i32) {
    %c0_i32 = arith.constant 0 : i32
    %c0_i32_0 = arith.constant 0 : i32
    %c0_i32_1 = arith.constant 0 : i32
    return %c0_i32, %arg0, %c0_i32_0 : i32, i32, i32
  }
  func.func @transform_1(%arg0: i32) -> (i32, i32) {
    %c0_i32 = arith.constant 0 : i32
    %c0_i32_0 = arith.constant 0 : i32
    %c0_i32_1 = arith.constant 0 : i32
    return %c0_i32, %c0_i32_0 : i32, i32
  }
  func.func @transform_2(%arg0: i32) -> (i32, i32) {
    %c0_i32 = arith.constant 0 : i32
    %c0_i32_0 = arith.constant 0 : i32
    %c0_i32_1 = arith.constant 0 : i32
    return %c0_i32, %c0_i32_0 : i32, i32
  }
  func.func @transform_3(%arg0: i32) -> (i32, i32) {
    %c0_i32 = arith.constant 0 : i32
    %c0_i32_0 = arith.constant 0 : i32
    %c0_i32_1 = arith.constant 0 : i32
    return %c0_i32, %c0_i32_0 : i32, i32
  }
  func.func @transform_4(%arg0: i32) -> (i32, i32) {
    %c0_i32 = arith.constant 0 : i32
    %c0_i32_0 = arith.constant 0 : i32
    %c0_i32_1 = arith.constant 0 : i32
    return %c0_i32, %c0_i32_0 : i32, i32
  }
  func.func @transform_5(%arg0: i32) -> (i32, i32) {
    %c0_i32 = arith.constant 0 : i32
    %c0_i32_0 = arith.constant 0 : i32
    %c0_i32_1 = arith.constant 0 : i32
    return %c0_i32, %c0_i32_0 : i32, i32
  }
  func.func @transform_6(%arg0: i32) -> (i32, i32, i32) {
    %c0_i32 = arith.constant 0 : i32
    %c0_i32_0 = arith.constant 0 : i32
    %c0_i32_1 = arith.constant 0 : i32
    return %c0_i32, %arg0, %c0_i32_0 : i32, i32, i32
  }
}

</mosaic_0001>

<bundles_post_ra>
// kernel: actor_forward.1
= control target key start
LH: loop header
LB: loop body
LE: loop exit
PB: predicated region body
PF: predicated region fallthrough
CT: control target
= control target key end

     0   :  { %v4465_v1 = vmov 0   ;;  %vm82_vm0 = vcmask 130048   ;;  %v42_v49 = vlaneseq  ;;  %vm2968_vm1 = vcmask 31744   ;;  %s4458_s1 = inlined_call_operand.vmem [shape: bf16[16,512], index: 1, kind: input, shape index: {}]   ;;  %s4459_s0 = inlined_call_operand.vmem [shape: f32[8,8,16], index: 0, kind: input, shape index: {}]   ;;  %s4460_s2 = inlined_call_operand.vmem [shape: bf16[128,512], index: 2, kind: input, shape index: {}]   ;;  %s4461_s3 = inlined_call_operand.vmem [shape: f32[1,512], index: 3, kind: input, shape index: {}]   ;;  %s4462_s4 = inlined_call_operand.vmem [shape: bf16[128,4], index: 4, kind: input, shape index: {}]   ;;  %s4463_s5 = inlined_call_operand.vmem [shape: f32[1,4], index: 5, kind: input, shape index: {}]   ;;  %s4464_s6 = inlined_call_operand.vmem [shape: f32[8,8,4], index: 6, kind: output, shape index: {}]  }
   0x1   :  { %v3338_v0 = vld [vmem:[%s4458_s1 + $0xc] ss:$16 sps:$4 sm:$0xff]   ;;  %200 = vmatprep.mubr.bf16.mxu1 %v4465_v1  ;;  %127 = vmatprep.mubr.bf16.mxu0 %v4465_v1  ;;  %v3340_v2 = vld [vmem:[%s4458_s1 + $0x8] ss:$16 sps:$4 sm:$0xff]   ;;  %v24_v3 = vld [vmem:[%s4459_s0] sm:$0xff] }
   0x2   :  { %v25_v4 = vld [vmem:[%s4459_s0 + $0x8] sm:$0xff]  ;;  %182 = vmatprep.subr.bf16.mxu1 %v3338_v0  ;;  %v3625_v6 = vld [vmem:[%s4460_s2 + $0xe0] ss:$16 sps:$4 sm:$0xff]   ;;  %v3630_v7 = vld [vmem:[%s4460_s2 + $0xe4] ss:$16 sps:$4 sm:$0xff]   ;;  %v43_v50 = vshrl.u32 %v42_v49, 7 }
   0x3   :  { %v32_v5 = vpack.c.bf16 %v25_v4, %v24_v3  ;;  %183 = vmatpush1.bf16.msra.mxu1 %v3340_v2  ;;  %v3635_v8 = vld [vmem:[%s4460_s2 + $0xc4] ss:$16 sps:$4 sm:$0xff]   ;;  %v3642_v9 = vld [vmem:[%s4460_s2 + $0xc0] ss:$16 sps:$4 sm:$0xff]   ;;  %v27_v11 = vld [vmem:[%s4459_s0 + $0x18] sm:$0xff] }
   0x4   :  { %554 = vmatprep.subr.bf16.mxu1 %v3630_v7  ;;  %v26_v10 = vld [vmem:[%s4459_s0 + $0x10] sm:$0xff]  ;;  %v28_v19 = vld [vmem:[%s4459_s0 + $0x20] sm:$0xff]  ;;  %v29_v20 = vld [vmem:[%s4459_s0 + $0x28] sm:$0xff]  ;;  %v52_v51 = vsub.s32 2, %v43_v50  ;;  %v56_v54 = vsub.s32 3, %v43_v50 }
   0x5   :  { %v3656_v12 = vld [vmem:[%s4460_s2 + $0xa4] ss:$16 sps:$4 sm:$0xff]   ;;  %v33_v13 = vpack.c.bf16 %v27_v11, %v26_v10  ;;  %v3662_v14 = vld [vmem:[%s4460_s2 + $0xa0] ss:$16 sps:$4 sm:$0xff]   ;;  %v34_v22 = vpack.c.bf16 %v29_v20, %v28_v19  ;;  %v31_v27 = vld [vmem:[%s4459_s0 + $0x38] sm:$0xff] }
   0x6   :  { %2996 = vmatmul.mubr.msk.bf16.vlgmr.msra.gmra.mxu1 %vm82_vm0, %v32_v5  ;;  %v3668_v15 = vld [vmem:[%s4460_s2 + $0x84] ss:$16 sps:$4 sm:$0xff]   ;;  %v3361_v17 = vld [vmem:[%s4458_s1] ss:$16 sps:$4 sm:$0xff]   ;;  %v3760_v33 = vld [vmem:[%s4460_s2 + $0xec] ss:$16 sps:$4 sm:$0xff]  }
   0x7   :  { %555 = vmatpush1.bf16.msra.mxu1 %v3625_v6  ;;  %210 = vmatprep.mubr.bf16.mxu1 %v4465_v1  ;;  %v3359_v16 = vld [vmem:[%s4458_s1 + $0x4] ss:$16 sps:$4 sm:$0xff]   ;;  %v3680_v18 = vld [vmem:[%s4460_s2 + $0x80] ss:$16 sps:$4 sm:$0xff]   ;;  %v3769_v34 = vld [vmem:[%s4460_s2 + $0xe8] ss:$16 sps:$4 sm:$0xff]  }
   0x8   :  { %556 = vmatprep.subr.bf16.mxu1 %v3635_v8  ;;  %109 = vmatprep.subr.bf16.mxu0 %v3359_v16  ;;  %v3694_v21 = vld [vmem:[%s4460_s2 + $0x64] ss:$16 sps:$4 sm:$0xff]   ;;  %v3701_v23 = vld [vmem:[%s4460_s2 + $0x60] ss:$16 sps:$4 sm:$0xff]   ;;  %v3775_v35 = vld [vmem:[%s4460_s2 + $0xcc] ss:$16 sps:$4 sm:$0xff]  }
   0x9   :  { %110 = vmatpush1.bf16.msra.mxu0 %v3361_v17  ;;  %v3708_v24 = vld [vmem:[%s4460_s2 + $0x44] ss:$16 sps:$4 sm:$0xff]   ;;  %v3717_v25 = vld [vmem:[%s4460_s2 + $0x40] ss:$16 sps:$4 sm:$0xff]   ;;  %v3784_v36 = vld [vmem:[%s4460_s2 + $0xc8] ss:$16 sps:$4 sm:$0xff]  }
   0xa   :  { %858 = vmatprep.subr.bf16.mxu0 %v3630_v7  ;;  %v30_v26 = vld [vmem:[%s4459_s0 + $0x30] sm:$0xff]  ;;  %v3792_v37 = vld [vmem:[%s4460_s2 + $0xac] ss:$16 sps:$4 sm:$0xff]   ;;  %v3803_v38 = vld [vmem:[%s4460_s2 + $0xa8] ss:$16 sps:$4 sm:$0xff]   ;;  %v48_v16 = vsub.s32 1, %v43_v50 }
   0xb   :  { %557 = vmatpush1.bf16.msra.mxu1 %v3642_v9  ;;  %v3731_v28 = vld [vmem:[%s4460_s2 + $0x24] ss:$16 sps:$4 sm:$0xff]   ;;  %v35_v29 = vpack.c.bf16 %v31_v27, %v30_v26  ;;  %v3738_v30 = vld [vmem:[%s4460_s2 + $0x20] ss:$16 sps:$4 sm:$0xff]   ;;  %v3810_v39 = vld [vmem:[%s4460_s2 + $0x8c] ss:$16 sps:$4 sm:$0xff]  }
   0xc   :  { %558 = vmatprep.subr.bf16.mxu1 %v3656_v12  ;;  %2992 = vmatmul.mubr.msk.bf16.vlgmr.msra.gmra.mxu0 %vm82_vm0, %v32_v5  ;;  %v3743_v31 = vld [vmem:[%s4460_s2 + $0x4] ss:$16 sps:$4 sm:$0xff]   ;;  %v3752_v32 = vld [vmem:[%s4460_s2] ss:$16 sps:$4 sm:$0xff]   ;;  %v3819_v40 = vld [vmem:[%s4460_s2 + $0x88] ss:$16 sps:$4 sm:$0xff]  }
   0xd   :  { %859 = vmatpush1.bf16.msra.mxu0 %v3625_v6  ;;  %137 = vmatprep.mubr.bf16.mxu0 %v4465_v1  ;;  %v3825_v41 = vld [vmem:[%s4460_s2 + $0x6c] ss:$16 sps:$4 sm:$0xff]   ;;  %v3833_v42 = vld [vmem:[%s4460_s2 + $0x68] ss:$16 sps:$4 sm:$0xff]   ;;  %v40_v52 = vld [vmem:[%s4461_s3] sm:$0xf] }
   0xe   :  { %2997 = vmatmul.mubr.msk.bf16.gmra.mxu1 %vm82_vm0, %v33_v13  ;;  %860 = vmatprep.subr.bf16.mxu0 %v3635_v8  ;;  %v3839_v43 = vld [vmem:[%s4460_s2 + $0x4c] ss:$16 sps:$4 sm:$0xff]   ;;  %v3845_v44 = vld [vmem:[%s4460_s2 + $0x48] ss:$16 sps:$4 sm:$0xff]   ;;  %v3899_v56 = vrot.slane %v40_v52, %v52_v51  ;;  %v3901_v58 = vrot.slane %v40_v52, %v56_v54  ;;  %v44_v5 = vsub.s32 0, %v43_v50  ;;  %v49_v51 = vrot.slane %v40_v52, %v48_v16 }
   0xf   :  { %559 = vmatpush1.bf16.msra.mxu1 %v3662_v14  ;;  %220 = vmatprep.mubr.bf16.mxu1 %v4465_v1  ;;  %v3851_v45 = vld [vmem:[%s4460_s2 + $0x2c] ss:$16 sps:$4 sm:$0xff]   ;;  %v3857_v46 = vld [vmem:[%s4460_s2 + $0x28] ss:$16 sps:$4 sm:$0xff]  }
  0x10   :  { %560 = vmatprep.subr.bf16.mxu1 %v3668_v15  ;;  %v3863_v47 = vld [vmem:[%s4460_s2 + $0xc] ss:$16 sps:$4 sm:$0xff]   ;;  %v3869_v48 = vld [vmem:[%s4460_s2 + $0x8] ss:$16 sps:$4 sm:$0xff]  }
  0x11   :  { %861 = vmatpush1.bf16.msra.mxu0 %v3642_v9 }
  0x12   :  { %862 = vmatprep.subr.bf16.mxu0 %v3656_v12 }
  0x13   :  { %561 = vmatpush1.bf16.msra.mxu1 %v3680_v18 }
  0x14   :  { %562 = vmatprep.subr.bf16.mxu1 %v3694_v21  ;;  %2993 = vmatmul.mubr.msk.bf16.gmra.mxu0 %vm82_vm0, %v33_v13 }
  0x15   :  { %863 = vmatpush1.bf16.msra.mxu0 %v3662_v14  ;;  %147 = vmatprep.mubr.bf16.mxu0 %v4465_v1 }
  0x16   :  { %2998 = vmatmul.mubr.msk.bf16.gmra.mxu1 %vm82_vm0, %v34_v22  ;;  %864 = vmatprep.subr.bf16.mxu0 %v3668_v15 }
  0x17   :  { %563 = vmatpush1.bf16.msra.mxu1 %v3701_v23  ;;  %230 = vmatprep.mubr.bf16.mxu1 %v4465_v1 }
  0x18   :  { %564 = vmatprep.subr.bf16.mxu1 %v3708_v24 }
  0x19   :  { %865 = vmatpush1.bf16.msra.mxu0 %v3680_v18 }
  0x1a   :  { %866 = vmatprep.subr.bf16.mxu0 %v3694_v21 }
  0x1b   :  { %565 = vmatpush1.bf16.msra.mxu1 %v3717_v25 }
  0x1c   :  { %566 = vmatprep.subr.bf16.mxu1 %v3731_v28  ;;  %2994 = vmatmul.mubr.msk.bf16.gmra.mxu0 %vm82_vm0, %v34_v22  ;;  %v45_v22 = vrot.slane %v40_v52, %v44_v5 }
  0x1d   :  { %867 = vmatpush1.bf16.msra.mxu0 %v3701_v23  ;;  %157 = vmatprep.mubr.bf16.mxu0 %v4465_v1 }
  0x1e   :  { %2999 = vmatmul.mubr.msk.bf16.gmra.mxu1 %vm82_vm0, %v35_v29  ;;  %868 = vmatprep.subr.bf16.mxu0 %v3708_v24 }
  0x1f   :  { %567 = vmatpush1.bf16.msra.mxu1 %v3738_v30  ;;  %586 = vmatprep.mubr.bf16.mxu1 %v4465_v1 }
  0x20   :  { %568 = vmatprep.subr.bf16.mxu1 %v3743_v31 }
  0x21   :  { %869 = vmatpush1.bf16.msra.mxu0 %v3717_v25 }
  0x22   :  { %870 = vmatprep.subr.bf16.mxu0 %v3731_v28 }
  0x23   :  { %569 = vmatpush1.bf16.msra.mxu1 %v3752_v32 }
  0x24   :  { %595 = vmatprep.subr.bf16.mxu1 %v3760_v33  ;;  %2995 = vmatmul.mubr.msk.bf16.gmra.mxu0 %vm82_vm0, %v35_v29 }
  0x25   :  { %871 = vmatpush1.bf16.msra.mxu0 %v3738_v30  ;;  %890 = vmatprep.mubr.bf16.mxu0 %v4465_v1 }
  0x26   :  { %587 = vmatmul.mubr.bf16.vlgmr.msra.gmra.mxu1 %v4465_v1  ;;  %872 = vmatprep.subr.bf16.mxu0 %v3743_v31 }
  0x27   :  { %596 = vmatpush1.bf16.msra.mxu1 %v3769_v34  ;;  %627 = vmatprep.mubr.bf16.mxu1 %v4465_v1 }
  0x28   :  { %597 = vmatprep.subr.bf16.mxu1 %v3775_v35 }
  0x29   :  { %873 = vmatpush1.bf16.msra.mxu0 %v3752_v32 }
  0x2a   :  { %1163 = vmatprep.subr.bf16.mxu0 %v3630_v7 }
  0x2b   :  { %598 = vmatpush1.bf16.msra.mxu1 %v3784_v36 }
  0x2c   :  { %599 = vmatprep.subr.bf16.mxu1 %v3792_v37 }
  0x2f   :  { %600 = vmatpush1.bf16.msra.mxu1 %v3803_v38 }
  0x30   :  { %601 = vmatprep.subr.bf16.mxu1 %v3810_v39 }
  0x33   :  { %602 = vmatpush1.bf16.msra.mxu1 %v3819_v40 }
  0x34   :  { %603 = vmatprep.subr.bf16.mxu1 %v3825_v41 }
  0x37   :  { %604 = vmatpush1.bf16.msra.mxu1 %v3833_v42 }
  0x38   :  { %605 = vmatprep.subr.bf16.mxu1 %v3839_v43 }
  0x3b   :  { %606 = vmatpush1.bf16.msra.mxu1 %v3845_v44 }
  0x3c   :  { %607 = vmatprep.subr.bf16.mxu1 %v3851_v45 }
  0x3f   :  { %608 = vmatpush1.bf16.msra.mxu1 %v3857_v46 }
  0x40   :  { %609 = vmatprep.subr.bf16.mxu1 %v3863_v47 }
  0x43   :  { %610 = vmatpush1.bf16.msra.mxu1 %v3869_v48 }
  0x44   :  { %899 = vmatprep.subr.bf16.mxu1 %v3760_v33 }
  0x46   :  { %628 = vmatmul.mubr.bf16.vlgmr.msra.gmra.mxu1 %v4465_v1 }
  0x47   :  { %900 = vmatpush1.bf16.msra.mxu1 %v3769_v34  ;;  %931 = vmatprep.mubr.bf16.mxu1 %v4465_v1 }
  0x48   :  { %901 = vmatprep.subr.bf16.mxu1 %v3775_v35 }
  0x4b   :  { %902 = vmatpush1.bf16.msra.mxu1 %v3784_v36 }
  0x4c   :  { %903 = vmatprep.subr.bf16.mxu1 %v3792_v37 }
  0x4f   :  { %904 = vmatpush1.bf16.msra.mxu1 %v3803_v38 }
  0x50   :  { %905 = vmatprep.subr.bf16.mxu1 %v3810_v39 }
  0x53   :  { %906 = vmatpush1.bf16.msra.mxu1 %v3819_v40 }
  0x54   :  { %907 = vmatprep.subr.bf16.mxu1 %v3825_v41 }
  0x57   :  { %908 = vmatpush1.bf16.msra.mxu1 %v3833_v42 }
  0x58   :  { %909 = vmatprep.subr.bf16.mxu1 %v3839_v43 }
  0x5b   :  { %910 = vmatpush1.bf16.msra.mxu1 %v3845_v44 }
  0x5c   :  { %911 = vmatprep.subr.bf16.mxu1 %v3851_v45 }
  0x5f   :  { %912 = vmatpush1.bf16.msra.mxu1 %v3857_v46 }
  0x60   :  { %913 = vmatprep.subr.bf16.mxu1 %v3863_v47 }
  0x63   :  { %914 = vmatpush1.bf16.msra.mxu1 %v3869_v48 }
  0x64   :  { %1204 = vmatprep.subr.bf16.mxu1 %v3760_v33 }
  0xc6   :  { %v3895_v53 = vpop.f32.mrf.mxu1 }
  0xc8   :  { %v3897_v55 = vpop.f32.mrf.mxu1 }
  0xca   :  { %v206_v57 = vpop.f32.mrf.mxu1 }
  0xcb   :  { %v207_v59 = vadd.f32 %v206_v57, %v3899_v56 }
  0xcc   :  { %v208_v60 = vpop.f32.mrf.mxu1  ;;  %v129_v11 = vpop.f32.mrf.mxu0 }
  0xcd   :  { %v209_v61 = vadd.f32 %v208_v60, %v3901_v58 }
  0xce   :  { %v212_v62 = vpop.f32.mrf.mxu1  ;;  %v131_v19 = vpop.f32.mrf.mxu0 }
  0xcf   :  { %v3905_v63 = vpack.c.bf16 %v209_v61, %v207_v59  ;;  %v213_v0 = vadd.f32 %v212_v62, %v3899_v56 }
  0xd0   :  { %v214_v2 = vpop.f32.mrf.mxu1  ;;  %v133_v29 = vpop.f32.mrf.mxu0 }
  0xd1   :  { %v215_v3 = vadd.f32 %v214_v2, %v3901_v58  ;;  %v134_v54 = vadd.f32 %v133_v29, %v45_v22 }
  0xd2   :  { %v216_v4 = vpop.f32.mrf.mxu1  ;;  %v135_v59 = vpop.f32.mrf.mxu0 }
  0xd3   :  { %v3909_v7 = vpack.c.bf16 %v215_v3, %v213_v0  ;;  %v217_v10 = vadd.f32 %v216_v4, %v3899_v56  ;;  %v136_v61 = vadd.f32 %v135_v59, %v49_v51 }
  0xd4   :  { %v218_v13 = vpop.f32.mrf.mxu1  ;;  %v139_v0 = vpop.f32.mrf.mxu0 }
  0xd5   :  { %4475 = vst [vmem:[#allocation4_spill] sm:$0xff] %v3909_v7  ;;  %v219_v17 = vadd.f32 %v218_v13, %v3901_v58  ;;  %v3920_v3 = vpack.c.bf16 %v136_v61, %v134_v54  ;;  %v140_v4 = vadd.f32 %v139_v0, %v45_v22  ;;  %v132_v7 = vadd.f32 %v131_v19, %v49_v51 }
  0xd6   :  { %v222_v20 = vpop.f32.mrf.mxu1 }
  0xd7   :  { %v3913_v26 = vpack.c.bf16 %v219_v17, %v217_v10  ;;  %v223_v27 = vadd.f32 %v222_v20, %v3899_v56  ;;  %v141_v10 = vpop.f32.mrf.mxu0 }
  0xd8   :  { %v224_v49 = vpop.f32.mrf.mxu1  ;;  %v142_v52 = vadd.f32 %v141_v10, %v49_v51 }
  0xd9   :  { %4476 = vst [vmem:[#allocation5_spill] sm:$0xff] %v3913_v26  ;;  %v225_v57 = vadd.f32 %v224_v49, %v3901_v58  ;;  %v143_v20 = vpop.f32.mrf.mxu0 }
  0xda   :  { %v226_v60 = vpop.f32.mrf.mxu1  ;;  %v144_v49 = vadd.f32 %v143_v20, %v45_v22 }
  0xdb   :  { %v3917_v62 = vpack.c.bf16 %v225_v57, %v223_v27  ;;  %v227_v50 = vadd.f32 %v226_v60, %v3899_v56  ;;  %v3926_v27 = vpack.c.bf16 %v142_v52, %v140_v4  ;;  %v145_v59 = vpop.f32.mrf.mxu0 }
  0xdc   :  { %v228_v2 = vpop.f32.mrf.mxu1  ;;  %v146_v60 = vadd.f32 %v145_v59, %v49_v51 }
  0xdd   :  { %4477 = vst [vmem:[#allocation6_spill] sm:$0xff] %v3917_v62  ;;  %v229_v5 = vadd.f32 %v228_v2, %v3901_v58  ;;  %v149_v2 = vpop.f32.mrf.mxu0 }
  0xde   :  { %v232_v13 = vpop.f32.mrf.mxu1 }
  0xdf   :  { %v3923_v16 = vpack.c.bf16 %v229_v5, %v227_v50  ;;  %v233_v17 = vadd.f32 %v232_v13, %v3899_v56  ;;  %v3932_v50 = vpack.c.bf16 %v146_v60, %v144_v49  ;;  %v150_v5 = vadd.f32 %v149_v2, %v45_v22  ;;  %v151_v1 = vpop.f32.mrf.mxu0 }
  0xe0   :  { %v234_v29 = vpop.f32.mrf.mxu1  ;;  %v152_v52 = vadd.f32 %v151_v1, %v49_v51 }
  0xe1   :  { %4478 = vst [vmem:[#allocation7_spill] sm:$0xff] %v3923_v16  ;;  %v235_v57 = vadd.f32 %v234_v29, %v3901_v58  ;;  %4480 = vst [vmem:[#allocation9_spill] sm:$0xff] %v3932_v50  ;;  %v153_v29 = vpop.f32.mrf.mxu0  ;;  %v130_v50 = vadd.f32 %v129_v11, %v45_v22 }
  0xe2   :  { %v236_v54 = vpop.f32.mrf.mxu1  ;;  %v3937_v62 = vpack.c.bf16 %v152_v52, %v150_v5 }
  0xe3   :  { %v3929_v61 = vpack.c.bf16 %v235_v57, %v233_v17  ;;  %v237_v0 = vadd.f32 %v236_v54, %v3899_v56  ;;  %v154_v17 = vadd.f32 %v153_v29, %v45_v22  ;;  %v155_v57 = vpop.f32.mrf.mxu0  ;;  %v3285_v52 = vpack.c.bf16 %v132_v7, %v130_v50 }
  0xe4   :  { %v238_v10 = vpop.f32.mrf.mxu1  ;;  %4482 = vst [vmem:[#allocation11_spill] sm:$0xff] %v3937_v62  ;;  %v156_v54 = vadd.f32 %v155_v57, %v49_v51 }
  0xe5   :  { %4479 = vst [vmem:[#allocation8_spill] sm:$0xff] %v3929_v61  ;;  %v239_v13 = vadd.f32 %v238_v10, %v3901_v58  ;;  %v159_v61 = vpop.f32.mrf.mxu0  ;;  %v358_v57 = vunpack.c.l.bf16 %v3285_v52 }
  0xe6   :  { %v588_v4 = vpop.f32.mrf.mxu1  ;;  %v3939_v49 = vpack.c.bf16 %v156_v54, %v154_v17  ;;  %v160_v60 = vadd.f32 %v159_v61, %v45_v22  ;;  %v205_v61 = vadd.f32 %v3897_v55, %v3901_v58 }
  0xe7   :  { %v3935_v20 = vpack.c.bf16 %v239_v13, %v237_v0  ;;  %v161_v2 = vpop.f32.mrf.mxu0  ;;  %v636_v11 = vadd.f32 %v588_v4, %v358_v57 }
  0xe8   :  { %v590_v16 = vpop.f32.mrf.mxu1  ;;  %v162_v10 = vadd.f32 %v161_v2, %v49_v51 }
  0xe9   :  { %4481 = vst [vmem:[#allocation10_spill] sm:$0xff] %v3935_v20  ;;  %v163_v1 = vpop.f32.mrf.mxu0 }
  0xea   :  { %v592_v59 = vpop.f32.mrf.mxu1  ;;  %v3941_v0 = vpack.c.bf16 %v162_v10, %v160_v60  ;;  %v164_v13 = vadd.f32 %v163_v1, %v45_v22 }
  0xeb   :  { %v165_v20 = vpop.f32.mrf.mxu0  ;;  %v359_v59 = vunpack.c.h.bf16 %v3285_v52 }
  0xec   :  { %v593_v26 = vpop.f32.mrf.mxu1  ;;  %v166_v5 = vadd.f32 %v165_v20, %v49_v51 }
  0xed   :  { %v637_v62 = vadd.f32 %v590_v16, %v359_v59  ;;  %v203_v26 = vadd.f32 %v3895_v53, %v3899_v56 }
  0xee   :  { %v3943_v29 = vpack.c.bf16 %v166_v5, %v164_v13 }
  0xef   :  { %3476 = vtanh.f32 %v637_v62  ;;  %v3286_v19 = vpack.c.bf16 %v205_v61, %v203_v26  ;;  %v4483_v61 = vmov 0  }
  0xf0   :  { %3478 = vtanh.f32 %v636_v11 }
  0xf1   :  { %v360_v17 = vunpack.c.l.bf16 %v3286_v19  ;;  %v361_v60 = vunpack.c.h.bf16 %v3286_v19 }
  0xfc   :  { %v3477_v50 = vpop.eup %3476 }
  0xfd   :  { %v3479_v16 = vpop.eup %3478  ;;  %v646_v2 = vadd.f32 1.0, %v3477_v50 }
  0xfe   :  { %v644_v53 = vadd.f32 1.0, %v3479_v16 }
  0xff   :  { %v647_v56 = vmul.f32 0.5, %v646_v2 }
 0x100   :  { %v645_v55 = vmul.f32 0.5, %v644_v53 }
 0x101   :  { %v650_v62 = vmul.f32 0.0, %v647_v56  ;;  %v4102_v56 = vld [vmem:[%s4460_s2] ss:$16 sps:$4 sm:$0xff]  }
 0x106   :  { %v629_v22 = vpop.f32.mrf.mxu1 }
 0x107   :  { %v638_v54 = vadd.f32 %v629_v22, %v360_v17 }
 0x108   :  { %v631_v51 = vpop.f32.mrf.mxu1 }
 0x109   :  { %3480 = vtanh.f32 %v638_v54  ;;  %v639_v10 = vadd.f32 %v631_v51, %v361_v60 }
 0x10a   :  { %v633_v7 = vpop.f32.mrf.mxu1 }
 0x10b   :  { %3482 = vtanh.f32 %v639_v10 }
 0x10c   :  { %v634_v20 = vpop.f32.mrf.mxu1 }
 0x116   :  { %v3481_v58 = vpop.eup %3480 }
 0x117   :  { %v651_v4 = vmul.f32 %v3481_v58, %v645_v55  ;;  %v967_v55 = vunpack.c.l.bf16 %v3926_v27 }
 0x118   :  { %v3483_v13 = vpop.eup %3482 }
 0x119   :  { %v3949_v1 = vadd.f32 %v651_v4, %v650_v62  ;;  %v648_v5 = vadd.f32 1.0, %v3483_v13 }
 0x11b   :  { %3484 = vtanh.f32 %v3949_v1  ;;  %v649_v52 = vmul.f32 0.5, %v648_v5  ;;  %v968_v5 = vunpack.c.h.bf16 %v3926_v27 }
 0x128   :  { %v3485_v59 = vpop.eup %3484 }
 0x129   :  { %v654_v57 = vmul.f32 %v3485_v59, %v649_v52 }
 0x12b   :  { %v655_v26 = vpack.c.bf16 %v654_v57, %v654_v57 }
 0x12d   :  { %656 = vst [vmem:[#allocation3] sm:$0xf] %v655_v26  ;;  %891 = vmatmul.mubr.bf16.vlgmr.msra.gmra.mxu0 %v655_v26  ;;  %932 = vmatmul.mubr.bf16.vlgmr.msra.gmra.mxu1 %v655_v26 }
 0x12e   :  { %1164 = vmatpush1.bf16.msra.mxu0 %v3625_v6  ;;  %1205 = vmatpush1.bf16.msra.mxu1 %v3769_v34  ;;  %v662_v6 = vunpack.c.l.bf16 %v3920_v3 }
 0x12f   :  { %1165 = vmatprep.subr.bf16.mxu0 %v3635_v8  ;;  %1206 = vmatprep.subr.bf16.mxu1 %v3775_v35 }
 0x130   :  { %1195 = vmatprep.mubr.bf16.mxu0 %v4483_v61  ;;  %1236 = vmatprep.mubr.bf16.mxu1 %v4483_v61 }
 0x132   :  { %1166 = vmatpush1.bf16.msra.mxu0 %v3642_v9  ;;  %1207 = vmatpush1.bf16.msra.mxu1 %v3784_v36 }
 0x133   :  { %1167 = vmatprep.subr.bf16.mxu0 %v3656_v12  ;;  %1208 = vmatprep.subr.bf16.mxu1 %v3792_v37 }
 0x136   :  { %1168 = vmatpush1.bf16.msra.mxu0 %v3662_v14  ;;  %1209 = vmatpush1.bf16.msra.mxu1 %v3803_v38  ;;  %v664_v14 = vunpack.c.l.bf16 %v3905_v63 }
 0x137   :  { %1169 = vmatprep.subr.bf16.mxu0 %v3668_v15  ;;  %1210 = vmatprep.subr.bf16.mxu1 %v3810_v39  ;;  %v663_v15 = vunpack.c.h.bf16 %v3920_v3 }
 0x13a   :  { %1170 = vmatpush1.bf16.msra.mxu0 %v3680_v18  ;;  %1211 = vmatpush1.bf16.msra.mxu1 %v3819_v40 }
 0x13b   :  { %1171 = vmatprep.subr.bf16.mxu0 %v3694_v21  ;;  %1212 = vmatprep.subr.bf16.mxu1 %v3825_v41 }
 0x13e   :  { %1172 = vmatpush1.bf16.msra.mxu0 %v3701_v23  ;;  %1213 = vmatpush1.bf16.msra.mxu1 %v3833_v42 }
 0x13f   :  { %1173 = vmatprep.subr.bf16.mxu0 %v3708_v24  ;;  %1214 = vmatprep.subr.bf16.mxu1 %v3839_v43 }
 0x142   :  { %1174 = vmatpush1.bf16.msra.mxu0 %v3717_v25  ;;  %1215 = vmatpush1.bf16.msra.mxu1 %v3845_v44 }
 0x143   :  { %1175 = vmatprep.subr.bf16.mxu0 %v3731_v28  ;;  %1216 = vmatprep.subr.bf16.mxu1 %v3851_v45 }
 0x146   :  { %1176 = vmatpush1.bf16.msra.mxu0 %v3738_v30  ;;  %1217 = vmatpush1.bf16.msra.mxu1 %v3857_v46 }
 0x147   :  { %1177 = vmatprep.subr.bf16.mxu0 %v3743_v31  ;;  %1218 = vmatprep.subr.bf16.mxu1 %v3863_v47 }
 0x14a   :  { %1178 = vmatpush1.bf16.msra.mxu0 %v3752_v32  ;;  %1219 = vmatpush1.bf16.msra.mxu1 %v3869_v48  ;;  %v665_v32 = vunpack.c.h.bf16 %v3905_v63 }
 0x14b   :  { %1509 = vmatprep.subr.bf16.mxu1 %v3760_v33 }
 0x1ed   :  { %v892_v8 = vpop.f32.mrf.mxu0  ;;  %v933_v9 = vpop.f32.mrf.mxu1 }
 0x1ee   :  { %v940_v12 = vadd.f32 %v892_v8, %v662_v6  ;;  %v942_v23 = vadd.f32 %v933_v9, %v664_v14 }
 0x1ef   :  { %v894_v18 = vpop.f32.mrf.mxu0  ;;  %v935_v21 = vpop.f32.mrf.mxu1 }
 0x1f0   :  { %3486 = vtanh.f32 %v940_v12  ;;  %v941_v24 = vadd.f32 %v894_v18, %v663_v15  ;;  %v943_v33 = vadd.f32 %v935_v21, %v665_v32 }
 0x1f1   :  { %v896_v25 = vpop.f32.mrf.mxu0  ;;  %v937_v28 = vpop.f32.mrf.mxu1 }
 0x1f2   :  { %3488 = vtanh.f32 %v941_v24 }
 0x1f3   :  { %v897_v30 = vpop.f32.mrf.mxu0  ;;  %v938_v31 = vpop.f32.mrf.mxu1  ;;  %3490 = vtanh.f32 %v942_v23 }
 0x1f4   :  { %3492 = vtanh.f32 %v943_v33 }
 0x1fd   :  { %v3487_v11 = vpop.eup %3486 }
 0x1fe   :  { %v948_v19 = vadd.f32 1.0, %v3487_v11 }
 0x1ff   :  { %v3489_v17 = vpop.eup %3488 }
 0x200   :  { %v949_v22 = vmul.f32 0.5, %v948_v19  ;;  %v950_v54 = vadd.f32 1.0, %v3489_v17  ;;  %v3491_v3 = vpop.eup %3490 }
 0x201   :  { %v3493_v60 = vpop.eup %3492 }
 0x202   :  { %v951_v51 = vmul.f32 0.5, %v950_v54  ;;  %v955_v7 = vmul.f32 %v3491_v3, %v949_v22  ;;  %v952_v16 = vadd.f32 1.0, %v3493_v60  ;;  %v4136_v3 = vld [vmem:[%s4460_s2 + $0xec] ss:$16 sps:$4 sm:$0xff]   ;;  %v4165_v60 = vld [vmem:[%s4460_s2 + $0xa8] ss:$16 sps:$4 sm:$0xff]  }
 0x204   :  { %v954_v50 = vmul.f32 %v951_v51, %v3949_v1  ;;  %v953_v2 = vmul.f32 0.5, %v952_v16  ;;  %v4484_v1 = vld [vmem:[#allocation4_spill] sm:$0xff]  ;;  %v4141_v51 = vld [vmem:[%s4460_s2 + $0xe8] ss:$16 sps:$4 sm:$0xff]   ;;  %v4172_v16 = vld [vmem:[%s4460_s2 + $0x8c] ss:$16 sps:$4 sm:$0xff]  }
 0x205   :  { %v969_v13 = vunpack.c.l.bf16 %v4484_v1  ;;  %v970_v14 = vunpack.c.h.bf16 %v4484_v1  ;;  %v4225_v1 = vld [vmem:[%s4460_s2 + $0x8] ss:$16 sps:$4 sm:$0xff]  }
 0x206   :  { %v3990_v20 = vadd.f32 %v955_v7, %v954_v50  ;;  %v4148_v7 = vld [vmem:[%s4460_s2 + $0xcc] ss:$16 sps:$4 sm:$0xff]   ;;  %v4153_v50 = vld [vmem:[%s4460_s2 + $0xc8] ss:$16 sps:$4 sm:$0xff]  }
 0x208   :  { %3494 = vtanh.f32 %v3990_v20 }
 0x215   :  { %v3495_v63 = vpop.eup %3494 }
 0x216   :  { %v958_v10 = vmul.f32 %v3495_v63, %v953_v2  ;;  %v4177_v2 = vld [vmem:[%s4460_s2 + $0x88] ss:$16 sps:$4 sm:$0xff]   ;;  %v4184_v63 = vld [vmem:[%s4460_s2 + $0x6c] ss:$16 sps:$4 sm:$0xff]  }
 0x218   :  { %v959_v53 = vpack.c.bf16 %v958_v10, %v958_v10  ;;  %v4189_v10 = vld [vmem:[%s4460_s2 + $0x68] ss:$16 sps:$4 sm:$0xff]  }
 0x21a   :  { %961 = vst [vmem:[#allocation3 + $0x4] sm:$0xf] %v959_v53  ;;  %1196 = vmatmul.mubr.bf16.vlgmr.msra.gmra.mxu0 %v959_v53  ;;  %1237 = vmatmul.mubr.bf16.vlgmr.msra.gmra.mxu1 %v959_v53  ;;  %v4196_v53 = vld [vmem:[%s4460_s2 + $0x4c] ss:$16 sps:$4 sm:$0xff]  }
 0x21b   :  { %1510 = vmatpush1.bf16.msra.mxu1 %v3769_v34  ;;  %1500 = vmatprep.mubr.bf16.mxu0 %v4483_v61  ;;  %v4013_v34 = vld [vmem:[%s4460_s2 + $0xe4] ss:$16 sps:$4 sm:$0xff]  }
 0x21c   :  { %1511 = vmatprep.subr.bf16.mxu1 %v3775_v35  ;;  %1541 = vmatprep.mubr.bf16.mxu1 %v4483_v61  ;;  %v4018_v35 = vld [vmem:[%s4460_s2 + $0xe0] ss:$16 sps:$4 sm:$0xff]  }
 0x21d   :  { %1468 = vmatprep.subr.bf16.mxu0 %v4013_v34 }
 0x21e   :  { %1469 = vmatpush1.bf16.msra.mxu0 %v4018_v35 }
 0x21f   :  { %1512 = vmatpush1.bf16.msra.mxu1 %v3784_v36  ;;  %v4025_v36 = vld [vmem:[%s4460_s2 + $0xc4] ss:$16 sps:$4 sm:$0xff]  }
 0x220   :  { %1513 = vmatprep.subr.bf16.mxu1 %v3792_v37  ;;  %v4030_v37 = vld [vmem:[%s4460_s2 + $0xc0] ss:$16 sps:$4 sm:$0xff]   ;;  %1470 = vmatprep.subr.bf16.mxu0 %v4025_v36 }
 0x222   :  { %1471 = vmatpush1.bf16.msra.mxu0 %v4030_v37 }
 0x223   :  { %1514 = vmatpush1.bf16.msra.mxu1 %v3803_v38  ;;  %v4037_v38 = vld [vmem:[%s4460_s2 + $0xa4] ss:$16 sps:$4 sm:$0xff]  }
 0x224   :  { %1515 = vmatprep.subr.bf16.mxu1 %v3810_v39  ;;  %v4042_v39 = vld [vmem:[%s4460_s2 + $0xa0] ss:$16 sps:$4 sm:$0xff]   ;;  %1472 = vmatprep.subr.bf16.mxu0 %v4037_v38 }
 0x226   :  { %1473 = vmatpush1.bf16.msra.mxu0 %v4042_v39 }
 0x227   :  { %1516 = vmatpush1.bf16.msra.mxu1 %v3819_v40  ;;  %v4049_v40 = vld [vmem:[%s4460_s2 + $0x84] ss:$16 sps:$4 sm:$0xff]  }
 0x228   :  { %1517 = vmatprep.subr.bf16.mxu1 %v3825_v41  ;;  %v4054_v41 = vld [vmem:[%s4460_s2 + $0x80] ss:$16 sps:$4 sm:$0xff]   ;;  %1474 = vmatprep.subr.bf16.mxu0 %v4049_v40 }
 0x22a   :  { %1475 = vmatpush1.bf16.msra.mxu0 %v4054_v41 }
 0x22b   :  { %1518 = vmatpush1.bf16.msra.mxu1 %v3833_v42  ;;  %v4061_v42 = vld [vmem:[%s4460_s2 + $0x64] ss:$16 sps:$4 sm:$0xff]  }
 0x22c   :  { %1519 = vmatprep.subr.bf16.mxu1 %v3839_v43  ;;  %v4066_v43 = vld [vmem:[%s4460_s2 + $0x60] ss:$16 sps:$4 sm:$0xff]   ;;  %1476 = vmatprep.subr.bf16.mxu0 %v4061_v42 }
 0x22e   :  { %1477 = vmatpush1.bf16.msra.mxu0 %v4066_v43 }
 0x22f   :  { %1520 = vmatpush1.bf16.msra.mxu1 %v3845_v44  ;;  %v4073_v44 = vld [vmem:[%s4460_s2 + $0x44] ss:$16 sps:$4 sm:$0xff]  }
 0x230   :  { %1521 = vmatprep.subr.bf16.mxu1 %v3851_v45  ;;  %v4078_v45 = vld [vmem:[%s4460_s2 + $0x40] ss:$16 sps:$4 sm:$0xff]   ;;  %1478 = vmatprep.subr.bf16.mxu0 %v4073_v44 }
 0x232   :  { %1479 = vmatpush1.bf16.msra.mxu0 %v4078_v45 }
 0x233   :  { %1522 = vmatpush1.bf16.msra.mxu1 %v3857_v46  ;;  %v4085_v46 = vld [vmem:[%s4460_s2 + $0x24] ss:$16 sps:$4 sm:$0xff]  }
 0x234   :  { %1523 = vmatprep.subr.bf16.mxu1 %v3863_v47  ;;  %v4090_v47 = vld [vmem:[%s4460_s2 + $0x20] ss:$16 sps:$4 sm:$0xff]   ;;  %1480 = vmatprep.subr.bf16.mxu0 %v4085_v46 }
 0x236   :  { %1481 = vmatpush1.bf16.msra.mxu0 %v4090_v47 }
 0x237   :  { %1524 = vmatpush1.bf16.msra.mxu1 %v3869_v48  ;;  %v4097_v48 = vld [vmem:[%s4460_s2 + $0x4] ss:$16 sps:$4 sm:$0xff]  }
 0x238   :  { %1482 = vmatprep.subr.bf16.mxu0 %v4097_v48  ;;  %1814 = vmatprep.subr.bf16.mxu1 %v4136_v3 }
 0x23a   :  { %1483 = vmatpush1.bf16.msra.mxu0 %v4102_v56 }
 0x23b   :  { %1773 = vmatprep.subr.bf16.mxu0 %v4013_v34 }
 0x2da   :  { %v1197_v58 = vpop.f32.mrf.mxu0  ;;  %v1238_v62 = vpop.f32.mrf.mxu1 }
 0x2db   :  { %v1245_v4 = vadd.f32 %v1197_v58, %v967_v55  ;;  %v1247_v57 = vadd.f32 %v1238_v62, %v969_v13  ;;  %v4201_v55 = vld [vmem:[%s4460_s2 + $0x48] ss:$16 sps:$4 sm:$0xff]   ;;  %v4208_v58 = vld [vmem:[%s4460_s2 + $0x2c] ss:$16 sps:$4 sm:$0xff]  }
 0x2dc   :  { %v1199_v52 = vpop.f32.mrf.mxu0  ;;  %v1240_v59 = vpop.f32.mrf.mxu1  ;;  %v4213_v62 = vld [vmem:[%s4460_s2 + $0x28] ss:$16 sps:$4 sm:$0xff]  }
 0x2dd   :  { %3496 = vtanh.f32 %v1245_v4  ;;  %v1246_v26 = vadd.f32 %v1199_v52, %v968_v5  ;;  %v1248_v15 = vadd.f32 %v1240_v59, %v970_v14  ;;  %v4220_v4 = vld [vmem:[%s4460_s2 + $0xc] ss:$16 sps:$4 sm:$0xff]  }
 0x2de   :  { %v1201_v6 = vpop.f32.mrf.mxu0  ;;  %v1242_v8 = vpop.f32.mrf.mxu1  ;;  %v4485_v13 = vld [vmem:[#allocation9_spill] sm:$0xff] }
 0x2df   :  { %3498 = vtanh.f32 %v1246_v26  ;;  %v1272_v5 = vunpack.c.l.bf16 %v4485_v13  ;;  %v4486_v26 = vld [vmem:[#allocation5_spill] sm:$0xff]  ;;  %v1273_v8 = vunpack.c.h.bf16 %v4485_v13 }
 0x2e0   :  { %v1202_v9 = vpop.f32.mrf.mxu0  ;;  %v1243_v12 = vpop.f32.mrf.mxu1  ;;  %3500 = vtanh.f32 %v1247_v57  ;;  %v1274_v6 = vunpack.c.l.bf16 %v4486_v26 }
 0x2e1   :  { %3502 = vtanh.f32 %v1248_v15 }
 0x2ea   :  { %v3497_v18 = vpop.eup %3496 }
 0x2eb   :  { %v1253_v21 = vadd.f32 1.0, %v3497_v18 }
 0x2ec   :  { %v3499_v23 = vpop.eup %3498 }
 0x2ed   :  { %v1254_v24 = vmul.f32 0.5, %v1253_v21  ;;  %v1255_v25 = vadd.f32 1.0, %v3499_v23  ;;  %v3501_v27 = vpop.eup %3500 }
 0x2ee   :  { %v3503_v33 = vpop.eup %3502 }
 0x2ef   :  { %v1256_v28 = vmul.f32 0.5, %v1255_v25  ;;  %v1260_v30 = vmul.f32 %v3501_v27, %v1254_v24  ;;  %v1257_v11 = vadd.f32 1.0, %v3503_v33  ;;  %v1275_v25 = vunpack.c.h.bf16 %v4486_v26 }
 0x2f1   :  { %v1259_v31 = vmul.f32 %v1256_v28, %v3990_v20  ;;  %v1258_v19 = vmul.f32 0.5, %v1257_v11  ;;  %v4160_v20 = vld [vmem:[%s4460_s2 + $0xac] ss:$16 sps:$4 sm:$0xff]  }
 0x2f3   :  { %v4112_v32 = vadd.f32 %v1260_v30, %v1259_v31 }
 0x2f5   :  { %3504 = vtanh.f32 %v4112_v32 }
 0x302   :  { %v3505_v17 = vpop.eup %3504 }
 0x303   :  { %v1263_v22 = vmul.f32 %v3505_v17, %v1258_v19 }
 0x305   :  { %v1264_v54 = vpack.c.bf16 %v1263_v22, %v1263_v22 }
 0x307   :  { %1266 = vst [vmem:[#allocation3 + $0x8] sm:$0xf] %v1264_v54  ;;  %1501 = vmatmul.mubr.bf16.vlgmr.msra.gmra.mxu0 %v1264_v54  ;;  %1542 = vmatmul.mubr.bf16.vlgmr.msra.gmra.mxu1 %v1264_v54 }
 0x308   :  { %1774 = vmatpush1.bf16.msra.mxu0 %v4018_v35  ;;  %1805 = vmatprep.mubr.bf16.mxu0 %v4483_v61 }
 0x309   :  { %1775 = vmatprep.subr.bf16.mxu0 %v4025_v36  ;;  %1846 = vmatprep.mubr.bf16.mxu1 %v4483_v61 }
 0x30a   :  { %1815 = vmatpush1.bf16.msra.mxu1 %v4141_v51 }
 0x30b   :  { %1816 = vmatprep.subr.bf16.mxu1 %v4148_v7 }
 0x30c   :  { %1776 = vmatpush1.bf16.msra.mxu0 %v4030_v37 }
 0x30d   :  { %1777 = vmatprep.subr.bf16.mxu0 %v4037_v38 }
 0x30e   :  { %1817 = vmatpush1.bf16.msra.mxu1 %v4153_v50 }
 0x30f   :  { %1818 = vmatprep.subr.bf16.mxu1 %v4160_v20 }
 0x310   :  { %1778 = vmatpush1.bf16.msra.mxu0 %v4042_v39 }
 0x311   :  { %1779 = vmatprep.subr.bf16.mxu0 %v4049_v40 }
 0x312   :  { %1819 = vmatpush1.bf16.msra.mxu1 %v4165_v60 }
 0x313   :  { %1820 = vmatprep.subr.bf16.mxu1 %v4172_v16 }
 0x314   :  { %1780 = vmatpush1.bf16.msra.mxu0 %v4054_v41 }
 0x315   :  { %1781 = vmatprep.subr.bf16.mxu0 %v4061_v42 }
 0x316   :  { %1821 = vmatpush1.bf16.msra.mxu1 %v4177_v2 }
 0x317   :  { %1822 = vmatprep.subr.bf16.mxu1 %v4184_v63 }
 0x318   :  { %1782 = vmatpush1.bf16.msra.mxu0 %v4066_v43 }
 0x319   :  { %1783 = vmatprep.subr.bf16.mxu0 %v4073_v44 }
 0x31a   :  { %1823 = vmatpush1.bf16.msra.mxu1 %v4189_v10 }
 0x31b   :  { %1824 = vmatprep.subr.bf16.mxu1 %v4196_v53 }
 0x31c   :  { %1784 = vmatpush1.bf16.msra.mxu0 %v4078_v45 }
 0x31d   :  { %1785 = vmatprep.subr.bf16.mxu0 %v4085_v46 }
 0x31e   :  { %1825 = vmatpush1.bf16.msra.mxu1 %v4201_v55 }
 0x31f   :  { %1826 = vmatprep.subr.bf16.mxu1 %v4208_v58 }
 0x320   :  { %1786 = vmatpush1.bf16.msra.mxu0 %v4090_v47 }
 0x321   :  { %1787 = vmatprep.subr.bf16.mxu0 %v4097_v48 }
 0x322   :  { %1827 = vmatpush1.bf16.msra.mxu1 %v4213_v62 }
 0x323   :  { %1828 = vmatprep.subr.bf16.mxu1 %v4220_v4 }
 0x324   :  { %1788 = vmatpush1.bf16.msra.mxu0 %v4102_v56 }
 0x325   :  { %2078 = vmatprep.subr.bf16.mxu0 %v4013_v34 }
 0x326   :  { %1829 = vmatpush1.bf16.msra.mxu1 %v4225_v1 }
 0x327   :  { %2119 = vmatprep.subr.bf16.mxu1 %v4136_v3 }
 0x3c7   :  { %v1502_v52 = vpop.f32.mrf.mxu0  ;;  %v1543_v59 = vpop.f32.mrf.mxu1 }
 0x3c8   :  { %v1550_v57 = vadd.f32 %v1502_v52, %v1272_v5  ;;  %v1552_v14 = vadd.f32 %v1543_v59, %v1274_v6 }
 0x3c9   :  { %v1504_v9 = vpop.f32.mrf.mxu0  ;;  %v1545_v12 = vpop.f32.mrf.mxu1 }
 0x3ca   :  { %3506 = vtanh.f32 %v1550_v57  ;;  %v1551_v15 = vadd.f32 %v1504_v9, %v1273_v8  ;;  %v1553_v27 = vadd.f32 %v1545_v12, %v1275_v25 }
 0x3cb   :  { %v1506_v18 = vpop.f32.mrf.mxu0  ;;  %v1547_v21 = vpop.f32.mrf.mxu1 }
 0x3cc   :  { %3508 = vtanh.f32 %v1551_v15  ;;  %v4488_v15 = vld [vmem:[#allocation6_spill] sm:$0xff] }
 0x3cd   :  { %v1507_v23 = vpop.f32.mrf.mxu0  ;;  %v1548_v24 = vpop.f32.mrf.mxu1  ;;  %3510 = vtanh.f32 %v1552_v14  ;;  %v1579_v18 = vunpack.c.l.bf16 %v4488_v15 }
 0x3ce   :  { %3512 = vtanh.f32 %v1553_v27 }
 0x3d7   :  { %v3507_v28 = vpop.eup %3506 }
 0x3d8   :  { %v1558_v30 = vadd.f32 1.0, %v3507_v28 }
 0x3d9   :  { %v3509_v31 = vpop.eup %3508 }
 0x3da   :  { %v1559_v33 = vmul.f32 0.5, %v1558_v30  ;;  %v1560_v11 = vadd.f32 1.0, %v3509_v31  ;;  %v3511_v19 = vpop.eup %3510 }
 0x3db   :  { %v3513_v5 = vpop.eup %3512 }
 0x3dc   :  { %v1561_v17 = vmul.f32 0.5, %v1560_v11  ;;  %v1565_v22 = vmul.f32 %v3511_v19, %v1559_v33  ;;  %v1562_v52 = vadd.f32 1.0, %v3513_v5  ;;  %v1580_v33 = vunpack.c.h.bf16 %v4488_v15 }
 0x3de   :  { %v1564_v54 = vmul.f32 %v1561_v17, %v4112_v32  ;;  %v1563_v59 = vmul.f32 0.5, %v1562_v52  ;;  %v4487_v32 = vld [vmem:[#allocation11_spill] sm:$0xff] }
 0x3df   :  { %v1577_v8 = vunpack.c.l.bf16 %v4487_v32  ;;  %v1578_v21 = vunpack.c.h.bf16 %v4487_v32 }
 0x3e0   :  { %v4235_v13 = vadd.f32 %v1565_v22, %v1564_v54 }
 0x3e2   :  { %3514 = vtanh.f32 %v4235_v13 }
 0x3ef   :  { %v3515_v57 = vpop.eup %3514 }
 0x3f0   :  { %v1568_v26 = vmul.f32 %v3515_v57, %v1563_v59 }
 0x3f2   :  { %v1569_v6 = vpack.c.bf16 %v1568_v26, %v1568_v26 }
 0x3f4   :  { %1571 = vst [vmem:[#allocation3 + $0xc] sm:$0xf] %v1569_v6  ;;  %1806 = vmatmul.mubr.bf16.vlgmr.msra.gmra.mxu0 %v1569_v6  ;;  %1847 = vmatmul.mubr.bf16.vlgmr.msra.gmra.mxu1 %v1569_v6 }
 0x3f5   :  { %2079 = vmatpush1.bf16.msra.mxu0 %v4018_v35  ;;  %2120 = vmatpush1.bf16.msra.mxu1 %v4141_v51 }
 0x3f6   :  { %2080 = vmatprep.subr.bf16.mxu0 %v4025_v36  ;;  %2121 = vmatprep.subr.bf16.mxu1 %v4148_v7 }
 0x3f7   :  { %2110 = vmatprep.mubr.bf16.mxu0 %v4483_v61  ;;  %2151 = vmatprep.mubr.bf16.mxu1 %v4483_v61 }
 0x3f9   :  { %2081 = vmatpush1.bf16.msra.mxu0 %v4030_v37  ;;  %2122 = vmatpush1.bf16.msra.mxu1 %v4153_v50 }
 0x3fa   :  { %2082 = vmatprep.subr.bf16.mxu0 %v4037_v38  ;;  %2123 = vmatprep.subr.bf16.mxu1 %v4160_v20 }
 0x3fd   :  { %2083 = vmatpush1.bf16.msra.mxu0 %v4042_v39  ;;  %2124 = vmatpush1.bf16.msra.mxu1 %v4165_v60 }
 0x3fe   :  { %2084 = vmatprep.subr.bf16.mxu0 %v4049_v40  ;;  %2125 = vmatprep.subr.bf16.mxu1 %v4172_v16 }
 0x401   :  { %2085 = vmatpush1.bf16.msra.mxu0 %v4054_v41  ;;  %2126 = vmatpush1.bf16.msra.mxu1 %v4177_v2 }
 0x402   :  { %2086 = vmatprep.subr.bf16.mxu0 %v4061_v42  ;;  %2127 = vmatprep.subr.bf16.mxu1 %v4184_v63 }
 0x405   :  { %2087 = vmatpush1.bf16.msra.mxu0 %v4066_v43  ;;  %2128 = vmatpush1.bf16.msra.mxu1 %v4189_v10 }
 0x406   :  { %2088 = vmatprep.subr.bf16.mxu0 %v4073_v44  ;;  %2129 = vmatprep.subr.bf16.mxu1 %v4196_v53 }
 0x409   :  { %2089 = vmatpush1.bf16.msra.mxu0 %v4078_v45  ;;  %2130 = vmatpush1.bf16.msra.mxu1 %v4201_v55 }
 0x40a   :  { %2090 = vmatprep.subr.bf16.mxu0 %v4085_v46  ;;  %2131 = vmatprep.subr.bf16.mxu1 %v4208_v58 }
 0x40d   :  { %2091 = vmatpush1.bf16.msra.mxu0 %v4090_v47  ;;  %2132 = vmatpush1.bf16.msra.mxu1 %v4213_v62 }
 0x40e   :  { %2092 = vmatprep.subr.bf16.mxu0 %v4097_v48  ;;  %2133 = vmatprep.subr.bf16.mxu1 %v4220_v4 }
 0x411   :  { %2093 = vmatpush1.bf16.msra.mxu0 %v4102_v56  ;;  %2134 = vmatpush1.bf16.msra.mxu1 %v4225_v1 }
 0x412   :  { %2383 = vmatprep.subr.bf16.mxu0 %v4013_v34  ;;  %2424 = vmatprep.subr.bf16.mxu1 %v4136_v3 }
 0x4b4   :  { %v1807_v9 = vpop.f32.mrf.mxu0  ;;  %v1848_v12 = vpop.f32.mrf.mxu1 }
 0x4b5   :  { %v1855_v14 = vadd.f32 %v1807_v9, %v1577_v8  ;;  %v1857_v25 = vadd.f32 %v1848_v12, %v1579_v18 }
 0x4b6   :  { %v1809_v23 = vpop.f32.mrf.mxu0  ;;  %v1850_v24 = vpop.f32.mrf.mxu1 }
 0x4b7   :  { %3516 = vtanh.f32 %v1855_v14  ;;  %v1856_v27 = vadd.f32 %v1809_v23, %v1578_v21  ;;  %v1858_v11 = vadd.f32 %v1850_v24, %v1580_v33 }
 0x4b8   :  { %v1811_v28 = vpop.f32.mrf.mxu0  ;;  %v1852_v30 = vpop.f32.mrf.mxu1 }
 0x4b9   :  { %3518 = vtanh.f32 %v1856_v27 }
 0x4ba   :  { %v1812_v34 = vpop.f32.mrf.mxu0  ;;  %v1853_v31 = vpop.f32.mrf.mxu1  ;;  %3520 = vtanh.f32 %v1857_v25 }
 0x4bb   :  { %3522 = vtanh.f32 %v1858_v11 }
 0x4c4   :  { %v3517_v19 = vpop.eup %3516 }
 0x4c5   :  { %v1863_v17 = vadd.f32 1.0, %v3517_v19 }
 0x4c6   :  { %v3519_v22 = vpop.eup %3518 }
 0x4c7   :  { %v1864_v54 = vmul.f32 0.5, %v1863_v17  ;;  %v1865_v5 = vadd.f32 1.0, %v3519_v22  ;;  %v3521_v52 = vpop.eup %3520 }
 0x4c8   :  { %v3523_v32 = vpop.eup %3522 }
 0x4c9   :  { %v1866_v59 = vmul.f32 0.5, %v1865_v5  ;;  %v1870_v57 = vmul.f32 %v3521_v52, %v1864_v54  ;;  %v1867_v8 = vadd.f32 1.0, %v3523_v32  ;;  %v3464_v54 = vld [vmem:[%s4462_s4 + $0x38] sm:$0xff]   ;;  %v2187_v5 = vunpack.c.l.bf16 %v3941_v0 }
 0x4ca   :  { %v2188_v32 = vunpack.c.h.bf16 %v3941_v0 }
 0x4cb   :  { %v1869_v26 = vmul.f32 %v1866_v59, %v4235_v13  ;;  %v1868_v9 = vmul.f32 0.5, %v1867_v8 }
 0x4cd   :  { %v4277_v6 = vadd.f32 %v1870_v57, %v1869_v26  ;;  %v4490_v26 = vld [vmem:[#allocation8_spill] sm:$0xff] }
 0x4cf   :  { %3524 = vtanh.f32 %v4277_v6 }
 0x4dc   :  { %v3525_v12 = vpop.eup %3524 }
 0x4dd   :  { %v1873_v14 = vmul.f32 %v3525_v12, %v1868_v9 }
 0x4df   :  { %v1874_v15 = vpack.c.bf16 %v1873_v14, %v1873_v14 }
 0x4e1   :  { %1876 = vst [vmem:[#allocation3 + $0x10] sm:$0xf] %v1874_v15  ;;  %2111 = vmatmul.mubr.bf16.vlgmr.msra.gmra.mxu0 %v1874_v15  ;;  %2152 = vmatmul.mubr.bf16.vlgmr.msra.gmra.mxu1 %v1874_v15 }
 0x4e2   :  { %2384 = vmatpush1.bf16.msra.mxu0 %v4018_v35  ;;  %2425 = vmatpush1.bf16.msra.mxu1 %v4141_v51  ;;  %v1882_v35 = vunpack.c.l.bf16 %v3939_v49 }
 0x4e3   :  { %2385 = vmatprep.subr.bf16.mxu0 %v4025_v36  ;;  %2426 = vmatprep.subr.bf16.mxu1 %v4148_v7 }
 0x4e4   :  { %2415 = vmatprep.mubr.bf16.mxu0 %v4483_v61  ;;  %2456 = vmatprep.mubr.bf16.mxu1 %v4483_v61 }
 0x4e6   :  { %2386 = vmatpush1.bf16.msra.mxu0 %v4030_v37  ;;  %2427 = vmatpush1.bf16.msra.mxu1 %v4153_v50 }
 0x4e7   :  { %2387 = vmatprep.subr.bf16.mxu0 %v4037_v38  ;;  %2428 = vmatprep.subr.bf16.mxu1 %v4160_v20 }
 0x4ea   :  { %2388 = vmatpush1.bf16.msra.mxu0 %v4042_v39  ;;  %2429 = vmatpush1.bf16.msra.mxu1 %v4165_v60  ;;  %v4489_v39 = vld [vmem:[#allocation7_spill] sm:$0xff] }
 0x4eb   :  { %2389 = vmatprep.subr.bf16.mxu0 %v4049_v40  ;;  %2430 = vmatprep.subr.bf16.mxu1 %v4172_v16  ;;  %v1884_v40 = vunpack.c.l.bf16 %v4489_v39 }
 0x4ee   :  { %2390 = vmatpush1.bf16.msra.mxu0 %v4054_v41  ;;  %2431 = vmatpush1.bf16.msra.mxu1 %v4177_v2  ;;  %v1883_v41 = vunpack.c.h.bf16 %v3939_v49 }
 0x4ef   :  { %2391 = vmatprep.subr.bf16.mxu0 %v4061_v42  ;;  %2432 = vmatprep.subr.bf16.mxu1 %v4184_v63 }
 0x4f2   :  { %2392 = vmatpush1.bf16.msra.mxu0 %v4066_v43  ;;  %2433 = vmatpush1.bf16.msra.mxu1 %v4189_v10 }
 0x4f3   :  { %2393 = vmatprep.subr.bf16.mxu0 %v4073_v44  ;;  %2434 = vmatprep.subr.bf16.mxu1 %v4196_v53 }
 0x4f6   :  { %2394 = vmatpush1.bf16.msra.mxu0 %v4078_v45  ;;  %2435 = vmatpush1.bf16.msra.mxu1 %v4201_v55 }
 0x4f7   :  { %2395 = vmatprep.subr.bf16.mxu0 %v4085_v46  ;;  %2436 = vmatprep.subr.bf16.mxu1 %v4208_v58 }
 0x4fa   :  { %2396 = vmatpush1.bf16.msra.mxu0 %v4090_v47  ;;  %2437 = vmatpush1.bf16.msra.mxu1 %v4213_v62 }
 0x4fb   :  { %2397 = vmatprep.subr.bf16.mxu0 %v4097_v48  ;;  %2438 = vmatprep.subr.bf16.mxu1 %v4220_v4 }
 0x4fe   :  { %2398 = vmatpush1.bf16.msra.mxu0 %v4102_v56  ;;  %2439 = vmatpush1.bf16.msra.mxu1 %v4225_v1 }
 0x4ff   :  { %2729 = vmatprep.subr.bf16.mxu1 %v4136_v3  ;;  %v1885_v3 = vunpack.c.h.bf16 %v4489_v39 }
 0x5a1   :  { %v2112_v36 = vpop.f32.mrf.mxu0  ;;  %v2153_v37 = vpop.f32.mrf.mxu1 }
 0x5a2   :  { %v2160_v38 = vadd.f32 %v2112_v36, %v1882_v35  ;;  %v2162_v44 = vadd.f32 %v2153_v37, %v1884_v40 }
 0x5a3   :  { %v2114_v42 = vpop.f32.mrf.mxu0  ;;  %v2155_v43 = vpop.f32.mrf.mxu1 }
 0x5a4   :  { %3526 = vtanh.f32 %v2160_v38  ;;  %v2161_v45 = vadd.f32 %v2114_v42, %v1883_v41  ;;  %v2163_v13 = vadd.f32 %v2155_v43, %v1885_v3  ;;  %v2190_v38 = vunpack.c.h.bf16 %v4490_v26 }
 0x5a5   :  { %v2116_v46 = vpop.f32.mrf.mxu0  ;;  %v2157_v47 = vpop.f32.mrf.mxu1 }
 0x5a6   :  { %3528 = vtanh.f32 %v2161_v45 }
 0x5a7   :  { %v2117_v48 = vpop.f32.mrf.mxu0  ;;  %v2158_v56 = vpop.f32.mrf.mxu1  ;;  %3530 = vtanh.f32 %v2162_v44 }
 0x5a8   :  { %3532 = vtanh.f32 %v2163_v13 }
 0x5b1   :  { %v3527_v18 = vpop.eup %3526 }
 0x5b2   :  { %v2168_v21 = vadd.f32 1.0, %v3527_v18 }
 0x5b3   :  { %v3529_v23 = vpop.eup %3528 }
 0x5b4   :  { %v2169_v24 = vmul.f32 0.5, %v2168_v21  ;;  %v2170_v25 = vadd.f32 1.0, %v3529_v23  ;;  %v3531_v49 = vpop.eup %3530 }
 0x5b5   :  { %v3533_v31 = vpop.eup %3532 }
 0x5b6   :  { %v2171_v27 = vmul.f32 0.5, %v2170_v25  ;;  %v2175_v28 = vmul.f32 %v3531_v49, %v2169_v24  ;;  %v2172_v33 = vadd.f32 1.0, %v3533_v31  ;;  %v3466_v24 = vld [vmem:[%s4462_s4 + $0x30] sm:$0xff]   ;;  %v3465_v25 = vld [vmem:[#allocation3] sm:$0xff]   ;;  %v3467_v49 = vld [vmem:[%s4462_s4 + $0x28] sm:$0xff]  }
 0x5b7   :  { %v3472_v31 = vld [vmem:[%s4462_s4] sm:$0xff]  }
 0x5b8   :  { %v2174_v30 = vmul.f32 %v2171_v27, %v4277_v6  ;;  %v2173_v11 = vmul.f32 0.5, %v2172_v33  ;;  %v2189_v6 = vunpack.c.l.bf16 %v4490_v26  ;;  %v3468_v27 = vld [vmem:[%s4462_s4 + $0x20] sm:$0xff]   ;;  %v3473_v33 = vld [vmem:[#allocation3 + $0x8] sm:$0xff]  }
 0x5ba   :  { %v4318_v34 = vadd.f32 %v2175_v28, %v2174_v30  ;;  %v3469_v28 = vld [vmem:[%s4462_s4 + $0x18] sm:$0xff]   ;;  %v3470_v30 = vld [vmem:[%s4462_s4 + $0x10] sm:$0xff]  }
 0x5bc   :  { %3534 = vtanh.f32 %v4318_v34 }
 0x5c9   :  { %v3535_v19 = vpop.eup %3534 }
 0x5ca   :  { %v2178_v17 = vmul.f32 %v3535_v19, %v2173_v11  ;;  %v2492_v19 = vunpack.c.l.bf16 %v3943_v29 }
 0x5cc   :  { %v2179_v22 = vpack.c.bf16 %v2178_v17, %v2178_v17 }
 0x5ce   :  { %2181 = vst [vmem:[#allocation3 + $0x14] sm:$0xf] %v2179_v22  ;;  %2416 = vmatmul.mubr.bf16.vlgmr.msra.gmra.mxu0 %v2179_v22  ;;  %2457 = vmatmul.mubr.bf16.vlgmr.msra.gmra.mxu1 %v2179_v22 }
 0x5cf   :  { %2730 = vmatpush1.bf16.msra.mxu1 %v4141_v51  ;;  %2720 = vmatprep.mubr.bf16.mxu0 %v4483_v61  ;;  %v3440_v51 = vld [vmem:[%s4460_s2 + $0xe0] ss:$16 sps:$4 sm:$0xff]  }
 0x5d0   :  { %2731 = vmatprep.subr.bf16.mxu1 %v4148_v7  ;;  %2761 = vmatprep.mubr.bf16.mxu1 %v4483_v61  ;;  %v3442_v61 = vld [vmem:[%s4460_s2 + $0xe4] ss:$16 sps:$4 sm:$0xff]  }
 0x5d1   :  { %2688 = vmatprep.subr.bf16.mxu0 %v3442_v61  ;;  %v3445_v7 = vld [vmem:[%s4460_s2 + $0xc4] ss:$16 sps:$4 sm:$0xff]  }
 0x5d2   :  { %2689 = vmatpush1.bf16.msra.mxu0 %v3440_v51  ;;  %v4491_v51 = vld [vmem:[#allocation10_spill] sm:$0xff] }
 0x5d3   :  { %2732 = vmatpush1.bf16.msra.mxu1 %v4153_v50  ;;  %v3443_v50 = vld [vmem:[%s4460_s2 + $0xc0] ss:$16 sps:$4 sm:$0xff]   ;;  %2690 = vmatprep.subr.bf16.mxu0 %v3445_v7  ;;  %v2494_v7 = vunpack.c.l.bf16 %v4491_v51 }
 0x5d4   :  { %2733 = vmatprep.subr.bf16.mxu1 %v4160_v20  ;;  %v3448_v20 = vld [vmem:[%s4460_s2 + $0xa4] ss:$16 sps:$4 sm:$0xff]  }
 0x5d5   :  { %v3474_v11 = vld [vmem:[#allocation3 + $0x10] sm:$0xff]  }
 0x5d6   :  { %2691 = vmatpush1.bf16.msra.mxu0 %v3443_v50  ;;  %v2493_v50 = vunpack.c.h.bf16 %v3943_v29 }
 0x5d7   :  { %2734 = vmatpush1.bf16.msra.mxu1 %v4165_v60  ;;  %v3446_v60 = vld [vmem:[%s4460_s2 + $0xa0] ss:$16 sps:$4 sm:$0xff]   ;;  %2692 = vmatprep.subr.bf16.mxu0 %v3448_v20 }
 0x5d8   :  { %2735 = vmatprep.subr.bf16.mxu1 %v4172_v16  ;;  %v3451_v16 = vld [vmem:[%s4460_s2 + $0x84] ss:$16 sps:$4 sm:$0xff]  }
 0x5da   :  { %2693 = vmatpush1.bf16.msra.mxu0 %v3446_v60 }
 0x5db   :  { %2736 = vmatpush1.bf16.msra.mxu1 %v4177_v2  ;;  %v3449_v2 = vld [vmem:[%s4460_s2 + $0x80] ss:$16 sps:$4 sm:$0xff]   ;;  %2694 = vmatprep.subr.bf16.mxu0 %v3451_v16 }
 0x5dc   :  { %2737 = vmatprep.subr.bf16.mxu1 %v4184_v63  ;;  %v3454_v63 = vld [vmem:[%s4460_s2 + $0x64] ss:$16 sps:$4 sm:$0xff]  }
 0x5de   :  { %2695 = vmatpush1.bf16.msra.mxu0 %v3449_v2 }
 0x5df   :  { %2738 = vmatpush1.bf16.msra.mxu1 %v4189_v10  ;;  %v3452_v10 = vld [vmem:[%s4460_s2 + $0x60] ss:$16 sps:$4 sm:$0xff]   ;;  %2696 = vmatprep.subr.bf16.mxu0 %v3454_v63 }
 0x5e0   :  { %2739 = vmatprep.subr.bf16.mxu1 %v4196_v53  ;;  %v3457_v53 = vld [vmem:[%s4460_s2 + $0x44] ss:$16 sps:$4 sm:$0xff]  }
 0x5e2   :  { %2697 = vmatpush1.bf16.msra.mxu0 %v3452_v10 }
 0x5e3   :  { %2740 = vmatpush1.bf16.msra.mxu1 %v4201_v55  ;;  %v3455_v55 = vld [vmem:[%s4460_s2 + $0x40] ss:$16 sps:$4 sm:$0xff]   ;;  %2698 = vmatprep.subr.bf16.mxu0 %v3457_v53 }
 0x5e4   :  { %2741 = vmatprep.subr.bf16.mxu1 %v4208_v58  ;;  %v3460_v58 = vld [vmem:[%s4460_s2 + $0x24] ss:$16 sps:$4 sm:$0xff]  }
 0x5e6   :  { %2699 = vmatpush1.bf16.msra.mxu0 %v3455_v55 }
 0x5e7   :  { %2742 = vmatpush1.bf16.msra.mxu1 %v4213_v62  ;;  %v3458_v62 = vld [vmem:[%s4460_s2 + $0x20] ss:$16 sps:$4 sm:$0xff]   ;;  %2700 = vmatprep.subr.bf16.mxu0 %v3460_v58  ;;  %v2495_v58 = vunpack.c.h.bf16 %v4491_v51 }
 0x5e8   :  { %2743 = vmatprep.subr.bf16.mxu1 %v4220_v4  ;;  %v3463_v4 = vld [vmem:[%s4460_s2 + $0x4] ss:$16 sps:$4 sm:$0xff]  }
 0x5ea   :  { %2701 = vmatpush1.bf16.msra.mxu0 %v3458_v62 }
 0x5eb   :  { %2744 = vmatpush1.bf16.msra.mxu1 %v4225_v1  ;;  %v3461_v1 = vld [vmem:[%s4460_s2] ss:$16 sps:$4 sm:$0xff]   ;;  %2702 = vmatprep.subr.bf16.mxu0 %v3463_v4 }
 0x5ee   :  { %2703 = vmatpush1.bf16.msra.mxu0 %v3461_v1 }
 0x5ef   :  { %3313 = vmatprep.subr.bf16.mxu0 %v3464_v54 }
 0x68e   :  { %v2417_v52 = vpop.f32.mrf.mxu0  ;;  %v2458_v59 = vpop.f32.mrf.mxu1 }
 0x68f   :  { %v2465_v57 = vadd.f32 %v2417_v52, %v2187_v5  ;;  %v2467_v12 = vadd.f32 %v2458_v59, %v2189_v6 }
 0x690   :  { %v2419_v8 = vpop.f32.mrf.mxu0  ;;  %v2460_v9 = vpop.f32.mrf.mxu1 }
 0x691   :  { %3536 = vtanh.f32 %v2465_v57  ;;  %v2466_v14 = vadd.f32 %v2419_v8, %v2188_v32  ;;  %v2468_v39 = vadd.f32 %v2460_v9, %v2190_v38  ;;  %v3272_v32 = vld [vmem:[%s4463_s5] ss:$0 sm:$0xff] }
 0x692   :  { %v2421_v15 = vpop.f32.mrf.mxu0  ;;  %v2462_v35 = vpop.f32.mrf.mxu1 }
 0x693   :  { %3538 = vtanh.f32 %v2466_v14 }
 0x694   :  { %v2422_v36 = vpop.f32.mrf.mxu0  ;;  %v2463_v37 = vpop.f32.mrf.mxu1  ;;  %3540 = vtanh.f32 %v2467_v12 }
 0x695   :  { %3542 = vtanh.f32 %v2468_v39 }
 0x69e   :  { %v3537_v40 = vpop.eup %3536 }
 0x69f   :  { %v2473_v41 = vadd.f32 1.0, %v3537_v40 }
 0x6a0   :  { %v3539_v42 = vpop.eup %3538 }
 0x6a1   :  { %v2474_v43 = vmul.f32 0.5, %v2473_v41  ;;  %v2475_v44 = vadd.f32 1.0, %v3539_v42  ;;  %v3541_v0 = vpop.eup %3540 }
 0x6a2   :  { %v3543_v56 = vpop.eup %3542 }
 0x6a3   :  { %v2476_v45 = vmul.f32 0.5, %v2475_v44  ;;  %v2480_v46 = vmul.f32 %v3541_v0, %v2474_v43  ;;  %v2477_v3 = vadd.f32 1.0, %v3543_v56 }
 0x6a5   :  { %v2479_v47 = vmul.f32 %v2476_v45, %v4318_v34  ;;  %v2478_v13 = vmul.f32 0.5, %v2477_v3  ;;  %v3471_v34 = vld [vmem:[%s4462_s4 + $0x8] sm:$0xff]  }
 0x6a7   :  { %v4394_v48 = vadd.f32 %v2480_v46, %v2479_v47 }
 0x6a9   :  { %3544 = vtanh.f32 %v4394_v48 }
 0x6b6   :  { %v3545_v18 = vpop.eup %3544 }
 0x6b7   :  { %v2483_v21 = vmul.f32 %v3545_v18, %v2478_v13 }
 0x6b9   :  { %v2484_v23 = vpack.c.bf16 %v2483_v21, %v2483_v21 }
 0x6bb   :  { %2486 = vst [vmem:[#allocation3 + $0x18] sm:$0xf] %v2484_v23  ;;  %2721 = vmatmul.mubr.bf16.vlgmr.msra.gmra.mxu0 %v2484_v23  ;;  %2762 = vmatmul.mubr.bf16.vlgmr.msra.gmra.mxu1 %v2484_v23 }
 0x6bc   :  { %3314 = vmatpush3.bf16.msra.mxu0 %v3464_v54  ;;  %3329 = vmatprep.mubr.bf16.mxu0 %v3465_v25 }
 0x6bd   :  { %3315 = vmatprep.subr.bf16.mxu0 %v3466_v24 }
 0x6c0   :  { %3316 = vmatpush3.bf16.msra.mxu0 %v3466_v24 }
 0x6c1   :  { %3317 = vmatprep.subr.bf16.mxu0 %v3467_v49 }
 0x6c4   :  { %3318 = vmatpush3.bf16.msra.mxu0 %v3467_v49 }
 0x6c5   :  { %3319 = vmatprep.subr.bf16.mxu0 %v3468_v27 }
 0x6c8   :  { %3320 = vmatpush3.bf16.msra.mxu0 %v3468_v27 }
 0x6c9   :  { %3321 = vmatprep.subr.bf16.mxu0 %v3469_v28 }
 0x6cc   :  { %3322 = vmatpush3.bf16.msra.mxu0 %v3469_v28 }
 0x6cd   :  { %3323 = vmatprep.subr.bf16.mxu0 %v3470_v30 }
 0x6d0   :  { %3324 = vmatpush3.bf16.msra.mxu0 %v3470_v30 }
 0x6d1   :  { %3325 = vmatprep.subr.bf16.mxu0 %v3471_v34 }
 0x6d4   :  { %3326 = vmatpush3.bf16.msra.mxu0 %v3471_v34 }
 0x6d5   :  { %3327 = vmatprep.subr.bf16.mxu0 %v3472_v31 }
 0x6d8   :  { %3328 = vmatpush3.bf16.msra.mxu0 %v3472_v31 }
 0x6db   :  { %3330 = vmatmul.mubr.bf16.vlgmr.msra.gmra.mxu0 %v3473_v33 }
 0x6dc   :  { %3333 = vmatprep.mubr.bf16.mxu0 %v3474_v11 }
 0x77b   :  { %v2722_v17 = vpop.f32.mrf.mxu0  ;;  %v2763_v22 = vpop.f32.mrf.mxu1 }
 0x77c   :  { %v2770_v61 = vadd.f32 %v2722_v17, %v2492_v19  ;;  %v2772_v16 = vadd.f32 %v2763_v22, %v2494_v7 }
 0x77d   :  { %v2724_v20 = vpop.f32.mrf.mxu0  ;;  %v2765_v60 = vpop.f32.mrf.mxu1 }
 0x77e   :  { %3546 = vtanh.f32 %v2770_v61  ;;  %v2771_v2 = vadd.f32 %v2724_v20, %v2493_v50  ;;  %v2773_v62 = vadd.f32 %v2765_v60, %v2495_v58 }
 0x77f   :  { %v2726_v63 = vpop.f32.mrf.mxu0  ;;  %v2767_v10 = vpop.f32.mrf.mxu1 }
 0x780   :  { %3548 = vtanh.f32 %v2771_v2 }
 0x781   :  { %v2727_v53 = vpop.f32.mrf.mxu0  ;;  %v2768_v55 = vpop.f32.mrf.mxu1  ;;  %3550 = vtanh.f32 %v2772_v16 }
 0x782   :  { %3552 = vtanh.f32 %v2773_v62 }
 0x78b   :  { %v3547_v4 = vpop.eup %3546 }
 0x78c   :  { %v2778_v1 = vadd.f32 1.0, %v3547_v4 }
 0x78d   :  { %v3549_v54 = vpop.eup %3548 }
 0x78e   :  { %v2779_v5 = vmul.f32 0.5, %v2778_v1  ;;  %v2780_v52 = vadd.f32 1.0, %v3549_v54  ;;  %v3551_v29 = vpop.eup %3550 }
 0x78f   :  { %v3553_v8 = vpop.eup %3552 }
 0x790   :  { %v2781_v59 = vmul.f32 0.5, %v2780_v52  ;;  %v2785_v57 = vmul.f32 %v3551_v29, %v2779_v5  ;;  %v2782_v15 = vadd.f32 1.0, %v3553_v8 }
 0x792   :  { %v2784_v26 = vmul.f32 %v2781_v59, %v4394_v48  ;;  %v2783_v39 = vmul.f32 0.5, %v2782_v15 }
 0x794   :  { %v2786_v6 = vadd.f32 %v2785_v57, %v2784_v26 }
 0x796   :  { %3554 = vtanh.f32 %v2786_v6 }
 0x79b   :  { %v3331_v9 = vpop.f32.mrf.mxu0 }
 0x79c   :  { %v2938_v12 = vadd.f32 %v3331_v9, %v3272_v32 }
 0x79d   :  { %v2929_v14 = vpop.f32.mrf.mxu0 }
 0x79e   :  { %3556 = vtanh.f32 %v2938_v12  ;;  %v2930_v35 = vadd.f32 %v3272_v32, %v2929_v14 }
 0x79f   :  { %v3332_v36 = vpop.f32.mrf.mxu0 }
 0x7a0   :  { %3558 = vtanh.f32 %v2930_v35  ;;  %v2941_v37 = vadd.f32 %v3332_v36, %v3272_v32 }
 0x7a1   :  { %v2932_v38 = vpop.f32.mrf.mxu0 }
 0x7a2   :  { %3560 = vtanh.f32 %v2941_v37  ;;  %v2933_v40 = vadd.f32 %v3272_v32, %v2932_v38 }
 0x7a3   :  { %v3555_v41 = vpop.eup %3554 }
 0x7a4   :  { %v2788_v42 = vmul.f32 %v3555_v41, %v2783_v39  ;;  %3562 = vtanh.f32 %v2933_v40 }
 0x7a6   :  { %v2789_v43 = vpack.c.bf16 %v2788_v42, %v2788_v42 }
 0x7a8   :  { %2791 = vst [vmem:[#allocation3 + $0x1c] sm:$0xf] %v2789_v43 }
 0x7ab   :  { %v3557_v44 = vpop.eup %3556 }
 0x7ac   :  { %2971 = vst.msk [vmem:[%s4464_s6 + $0x10] sm:$0xff] %vm2968_vm1, %v3557_v44 }
 0x7ad   :  { %v3559_v0 = vpop.eup %3558 }
 0x7ae   :  { %2969 = vst.msk [vmem:[%s4464_s6] sm:$0xff] %vm2968_vm1, %v3559_v0 }
 0x7af   :  { %v3561_v45 = vpop.eup %3560  ;;  %v3475_v46 = vld [vmem:[#allocation3 + $0x18] sm:$0xff]  }
 0x7b0   :  { %2972 = vst.msk [vmem:[%s4464_s6 + $0x18] sm:$0xff] %vm2968_vm1, %v3561_v45  ;;  %3334 = vmatmul.mubr.bf16.gmra.mxu0 %v3475_v46 }
 0x7b1   :  { %v3563_v47 = vpop.eup %3562 }
 0x7b2   :  { %2970 = vst.msk [vmem:[%s4464_s6 + $0x8] sm:$0xff] %vm2968_vm1, %v3563_v47 }
 0x870   :  { %v3335_v48 = vpop.f32.mrf.mxu0 }
 0x871   :  { %v2954_v56 = vadd.f32 %v3335_v48, %v3272_v32 }
 0x872   :  { %v2945_v3 = vpop.f32.mrf.mxu0 }
 0x873   :  { %3564 = vtanh.f32 %v2954_v56  ;;  %v2946_v13 = vadd.f32 %v3272_v32, %v2945_v3 }
 0x874   :  { %v3336_v18 = vpop.f32.mrf.mxu0 }
 0x875   :  { %3566 = vtanh.f32 %v2946_v13  ;;  %v2957_v21 = vadd.f32 %v3336_v18, %v3272_v32 }
 0x876   :  { %v2948_v23 = vpop.f32.mrf.mxu0 }
 0x877   :  { %3568 = vtanh.f32 %v2957_v21  ;;  %v2949_v24 = vadd.f32 %v3272_v32, %v2948_v23 }
 0x879   :  { %3570 = vtanh.f32 %v2949_v24 }
 0x880   :  { %v3565_v25 = vpop.eup %3564 }
 0x881   :  { %2975 = vst.msk [vmem:[%s4464_s6 + $0x30] sm:$0xff] %vm2968_vm1, %v3565_v25 }
 0x882   :  { %v3567_v49 = vpop.eup %3566 }
 0x883   :  { %2973 = vst.msk [vmem:[%s4464_s6 + $0x20] sm:$0xff] %vm2968_vm1, %v3567_v49 }
 0x884   :  { %v3569_v27 = vpop.eup %3568 }
 0x885   :  { %2976 = vst.msk [vmem:[%s4464_s6 + $0x38] sm:$0xff] %vm2968_vm1, %v3569_v27 }
 0x886   :  { %v3571_v28 = vpop.eup %3570 }
 0x887   :  { %2974 = vst.msk [vmem:[%s4464_s6 + $0x28] sm:$0xff] %vm2968_vm1, %v3571_v28 }

</bundles_post_ra>
